<compile_context>
chip_gen: v7x
topology: tpu7x:2x2x1
jax: 0.10.0
libtpu: 0.0.40
codegen_flags: <defaults>
</compile_context>

<pallas_src>
import math

import jax
import jax.numpy as jnp
from jax.experimental import pallas as pl
from jax.experimental.pallas import tpu as pltpu

NEG_BIG = -9000000000000000.0   # mask constant used by the torch module
ALPHA = 0.2                     # LeakyReLU slope of both attention stages
LN_EPS = 1e-6                   # nn.LayerNorm(hidden_size, eps=1e-06)


def _leaky_relu(x):
    return jnp.where(x > 0, x, ALPHA * x)


def _elu(x):
    return jnp.where(x > 0, x, jnp.exp(x) - 1.0)


def _round_up(n, m):
    return ((n + m - 1) // m) * m


# --------------------------------------------------------------------------
# Fused kernel: gat1 -> gat2 -> masked mean pool -> LayerNorm, one grid step per
# block of Bb batches.  Adjacency-independent transforms are flat 2-D matmuls over
# the whole block; attention aggregation is batched einsums; MXU operands bf16,
# accumulation f32; softmax stats / LN in f32.
# --------------------------------------------------------------------------
def _fused_forward_kernel(x_ref, adj_ref, poolw_ref, pa1_ref, prow1_ref,
                          w2aug_ref, prow2_ref, wcs_ref, gamma_ref, beta_ref,
                          o_ref):
    f32, bf16 = jnp.float32, jnp.bfloat16

    x = x_ref[...]                        # [Bb, Nn, D0]  embedded node features
    adj = adj_ref[...]                    # [Bb, Ne, Nn]  hyperedge x node incidence
    Bb, Nn, D0 = x.shape
    Ne = adj.shape[1]
    H = w2aug_ref.shape[1] - 2

    # Additive mask biases, computed once and shared by both GAT layers.
    # |score| << ulp(9e15) in f32, so `score + bias` equals the torch
    # where(adj > 0, score, NEG_BIG) bit-for-bit, incl. uniform softmax on
    # fully masked rows.  bias_n is a small in-kernel transpose (no adjT DMA).
    bias_e = jnp.where(adj > 0.0, 0.0, NEG_BIG).astype(f32)     # [Bb, Ne, Nn]
    bias_n = jnp.swapaxes(bias_e, 1, 2)                         # [Bb, Nn, Ne]

    def softmax_last(logits):
        m = jnp.max(logits, axis=-1, keepdims=True)
        p = jnp.exp(logits - m)
        return p * pl.reciprocal(jnp.sum(p, axis=-1, keepdims=True), approx=True)

    def gat(sc, xw, prow, wcs, concat):
        # sc   : [Bb, Nn, 2]   col0 = x@W2@a_bot (edge att), col1 = x@W2@a2_top (node att)
        # xw   : [Bb, Nn, dout] features aggregated into hyperedges
        # prow : [dout, 1]     folded W3@a2_bot edge score vector
        dout = xw.shape[-1]

        # ---- hyperedge attention: softmax over nodes for each hyperedge
        s1 = jnp.swapaxes(sc[:, :, 0:1], 1, 2)                  # [Bb, 1, Nn]
        e1 = _leaky_relu(s1 + wcs)
        att1 = softmax_last(e1 + bias_e)                        # [Bb, Ne, Nn]
        edge = jnp.einsum('ben,bnd->bed', att1.astype(bf16), xw.astype(bf16),
                          preferred_element_type=f32)           # [Bb, Ne, dout]

        # ---- node attention: softmax over hyperedges for each node
        c2 = sc[:, :, 1:2]                                      # [Bb, Nn, 1]
        r2 = jnp.dot(edge.reshape(Bb * Ne, dout).astype(bf16), prow.astype(bf16),
                     preferred_element_type=f32)                # [Bb*Ne, 1]
        r2 = jnp.swapaxes(r2.reshape(Bb, Ne, 1), 1, 2)          # [Bb, 1, Ne]
        att2 = softmax_last(_leaky_relu(c2 + r2) + bias_n)      # [Bb, Nn, Ne]
        node = jnp.einsum('bne,bed->bnd', att2.astype(bf16), edge.astype(bf16),
                          preferred_element_type=f32)           # [Bb, Nn, dout]
        return _elu(node) if concat else node

    # ---- GAT layer 1 (transfer=False, concat=True): aggregated features are x;
    #      both score columns come from one flat [Bb*Nn, D0] @ [D0, 2] matmul.
    sc1 = jnp.dot(x.reshape(Bb * Nn, D0).astype(bf16), pa1_ref[...].astype(bf16),
                  preferred_element_type=f32).reshape(Bb, Nn, 2)
    x1 = gat(sc1, x, prow1_ref[...], wcs_ref[0], concat=True)        # [Bb, Nn, D0]

    # ---- GAT layer 2 (transfer=True, concat=False): x1 @ [weight | ps1_2 | pc2_2]
    #      gives the transferred features and both score columns in one matmul.
    big = jnp.dot(x1.reshape(Bb * Nn, D0).astype(bf16), w2aug_ref[...].astype(bf16),
                  preferred_element_type=f32)                        # [Bb*Nn, H+2]
    xw2 = big[:, :H].reshape(Bb, Nn, H)
    sc2 = big[:, H:H + 2].reshape(Bb, Nn, 2)
    x2 = gat(sc2, xw2, prow2_ref[...], wcs_ref[1], concat=False)     # [Bb, Nn, H]

    # ---- masked mean pool (alias gather + mask^2 folded into poolw) + LayerNorm
    pooled = jnp.sum(x2 * poolw_ref[...], axis=1)                    # [Bb, H]
    mu = jnp.mean(pooled, axis=-1, keepdims=True)
    var = jnp.mean(jnp.square(pooled - mu), axis=-1, keepdims=True)
    y = (pooled - mu) * jax.lax.rsqrt(var + LN_EPS)
    o_ref[...] = (y * gamma_ref[...] + beta_ref[...]).astype(o_ref.dtype)


def _pick_block_b(n_batch, n_node, max_block=64):
    """Batches per grid step.  Prefer blocks big enough that Bb*Nn fills the MXU
    M dimension (>=256 rows); keep an even number of grid steps when that does not
    shrink below the row target (v7x dual-TC), otherwise grid=1 is fine ('parallel'
    is a no-op on 1-TC chips).  Bb must divide B and be a multiple of 8 (or equal
    B) so (Bb, ...) output/pool blocks stay sublane-tile aligned."""
    divs = [d for d in range(1, n_batch + 1) if n_batch % d == 0]
    legal = [d for d in divs if d <= max_block and (d % 8 == 0 or d == n_batch)]
    if not legal:
        return n_batch          # grid=1; full-array blocks are always legal
    rows_target = 256
    for d in sorted(legal, reverse=True):
        if (n_batch // d) % 2 == 0 and d * n_node >= rows_target:
            return d
    return max(legal)


def _vmem_limit_bytes():
    """~3/4 of physical VMEM (capped at 100 MiB): ~96 MiB on v5e/v6e (128 MiB),
    ~48 MiB on v7x (64 MiB physical)."""
    try:
        cap = int(pltpu.get_tpu_info().vmem_capacity_bytes)
    except Exception:
        return 48 * 1024 * 1024   # conservative fallback, valid on every generation
    return min(100 * 1024 * 1024, (cap * 3) // 4)


# --------------------------------------------------------------------------
# full HyperGraph_Model forward (eval mode)
# --------------------------------------------------------------------------
def hypergraph_model_forward(params, alias_inputs, HT, items, node_masks,
                             block_b=None):
    B, Nn = items.shape
    Ne = HT.shape[1]
    D0 = params["embedding"].shape[1]
    H = params["gat2"]["weight"].shape[1]
    f32 = jnp.float32

    # Pad node / edge counts to multiples of 8 so in-kernel leading-dim merges are
    # tile-aligned (no hidden VMEM relayouts).  Padded nodes/edges have zero
    # incidence and zero pool weight, so they cannot affect the output.
    Nn_p = _round_up(Nn, 8)
    Ne_p = _round_up(Ne, 8)

    # TODO(synk): embedding row-gather (and the original Glove/pickle vocab load)
    # stays in XLA; at [B,Nn,D0] it is a few KiB.
    x = jnp.take(params["embedding"], items, axis=0).astype(f32)        # [B,Nn,D0]
    x = jnp.pad(x, ((0, 0), (0, Nn_p - Nn), (0, 0)))
    adj = jnp.pad(HT.astype(f32), ((0, 0), (0, Ne_p - Ne), (0, Nn_p - Nn)))

    # Fold alias gather + masked mean pool into one pooling-weight column per batch:
    #   b = sum_j mask[j]^2 * x2[alias[j]] / sum_j mask[j]  ==  sum_n poolw[n]*x2[n]
    msum = jnp.sum(node_masks, axis=-1, keepdims=True)                  # [B,1]
    pw = jnp.zeros((B, Nn), f32).at[
        jnp.arange(B)[:, None], alias_inputs].add(node_masks * node_masks)
    poolw = jnp.pad(pw / msum, ((0, 0), (0, Nn_p - Nn)))[..., None]     # [B,Nn_p,1]
    # (NaN only if a sample has zero valid nodes, matching the torch division.)

    # Fold W2 / W3 into score vectors ((x@W2)@a == x@(W2@a); fp reassociation only).
    def score_vectors(g):
        ps1 = g["weight2"] @ g["a"][1]        # [Din]  edge-attention node score
        pc2 = g["weight2"] @ g["a2"][0]       # [Din]  node-attention node score
        prow = g["weight3"] @ g["a2"][1]      # [Dout] node-attention edge score
        wcs = jnp.sum(g["word_context"][0] * g["a"][0])
        return ps1, pc2, prow, wcs

    g1, g2 = params["gat1"], params["gat2"]
    ps1_1, pc2_1, prow_1, wcs1 = score_vectors(g1)
    ps1_2, pc2_2, prow_2, wcs2 = score_vectors(g2)

    pa1 = jnp.stack([ps1_1, pc2_1], axis=1).astype(f32)                 # [D0, 2]
    w2aug = jnp.concatenate([g2["weight"], ps1_2[:, None], pc2_2[:, None]],
                            axis=1).astype(f32)                         # [D0, H+2]
    prow1 = prow_1[:, None].astype(f32)                                 # [D0, 1]
    prow2 = prow_2[:, None].astype(f32)                                 # [H, 1]
    wcs = jnp.stack([wcs1, wcs2]).astype(f32)                           # (2,) -> SMEM

    Bb = _pick_block_b(B, Nn_p) if block_b is None else block_b
    assert B % Bb == 0, (B, Bb)

    batch3 = lambda b: (b, 0, 0)
    batch2 = lambda b: (b, 0)
    const2 = lambda b: (0, 0)

    in_specs = [
        pl.BlockSpec((Bb, Nn_p, D0), batch3),                 # x
        pl.BlockSpec((Bb, Ne_p, Nn_p), batch3),               # adj (HT)
        pl.BlockSpec((Bb, Nn_p, 1), batch3),                  # poolw
        pl.BlockSpec((D0, 2), const2),                        # pa1 (layer-1 scores)
        pl.BlockSpec((D0, 1), const2),                        # prow1
        pl.BlockSpec((D0, H + 2), const2),                    # weight2 | ps1_2 | pc2_2
        pl.BlockSpec((H, 1), const2),                         # prow2
        pl.BlockSpec(memory_space=pltpu.MemorySpace.SMEM),    # word-context scalars
        pl.BlockSpec((1, H), const2),                         # LayerNorm gamma
        pl.BlockSpec((1, H), const2),                         # LayerNorm beta
    ]

    out = pl.pallas_call(
        _fused_forward_kernel,
        out_shape=jax.ShapeDtypeStruct((B, H), f32),
        grid_spec=pltpu.PrefetchScalarGridSpec(
            num_scalar_prefetch=0,
            grid=(B // Bb,),
            in_specs=in_specs,
            out_specs=pl.BlockSpec((Bb, H), batch2),          # dense 2-D store
        ),
        compiler_params=pltpu.CompilerParams(
            dimension_semantics=("parallel",),
            vmem_limit_bytes=_vmem_limit_bytes(),
        ),
    )(x, adj, poolw, pa1, prow1, w2aug, prow2, wcs,
      params["ln_gamma"].reshape(1, H), params["ln_beta"].reshape(1, H))
    return out


# --------------------------------------------------------------------------
# pure-JAX reference (mirrors the torch module's dense-equivalent math); the
# tolerance accounts for bf16 MXU operands / approx reciprocal in the kernel.
# --------------------------------------------------------------------------
def _reference_forward(params, alias_inputs, HT, items, node_masks):
    def gat_ref(x, adj, p, transfer, concat):
        x4 = x @ p["weight2"]
        xw = x @ p["weight"] if transfer else x
        a_top, a_bot = p["a"][0], p["a"][1]
        wcs = jnp.sum(p["word_context"][0] * a_top)
        s1 = x4 @ a_bot + wcs                                   # [B, Nn]
        e1 = jnp.where(s1 > 0, s1, ALPHA * s1)[:, None, :]      # [B, 1, Nn]
        att1 = jax.nn.softmax(
            jnp.where(adj > 0, jnp.broadcast_to(e1, adj.shape), NEG_BIG), axis=-1)
        edge = att1 @ xw                                        # [B, Ne, Dout]
        edge4 = edge @ p["weight3"]
        a2_top, a2_bot = p["a2"][0], p["a2"][1]
        col = x4 @ a2_top                                       # [B, Nn]
        row = edge4 @ a2_bot                                    # [B, Ne]
        e2 = col[:, :, None] + row[:, None, :]
        e2 = jnp.where(e2 > 0, e2, ALPHA * e2)
        att2 = jax.nn.softmax(
            jnp.where(jnp.swapaxes(adj, 1, 2) > 0, e2, NEG_BIG), axis=-1)
        node = att2 @ edge                                      # [B, Nn, Dout]
        return jnp.where(node > 0, node, jnp.exp(node) - 1.0) if concat else node

    hidden = jnp.take(params["embedding"], items, axis=0)
    x1 = gat_ref(hidden, HT, params["gat1"], False, True)
    x2 = gat_ref(x1, HT, params["gat2"], True, False)
    seq = jnp.take_along_axis(x2, alias_inputs[..., None], axis=1)
    m = node_masks[..., None]
    b = jnp.sum(seq * m * m, axis=1) / jnp.sum(node_masks, axis=-1, keepdims=True)
    mu = jnp.mean(b, axis=-1, keepdims=True)
    var = jnp.mean((b - mu) ** 2, axis=-1, keepdims=True)
    y = (b - mu) / jnp.sqrt(var + LN_EPS)
    return y * params["ln_gamma"] + params["ln_beta"]


# --------------------------------------------------------------------------
# deterministic parameter init (mirrors the module's reset_parameters shapes)
# --------------------------------------------------------------------------
def init_params(key, n_vocab, D0, H):
    def uni(k, shape, stdv):
        return jax.random.uniform(k, shape, jnp.float32, -stdv, stdv)

    ks = jax.random.split(key, 16)
    s1 = 1.0 / math.sqrt(D0)
    gat1 = {                                       # in=D0, out=D0, transfer=False
        "weight2": uni(ks[0], (D0, D0), s1),
        "weight3": uni(ks[1], (D0, D0), s1),
        "a":       uni(ks[2], (2, D0), s1),        # row0 = a[:out,0], row1 = a[out:,0]
        "a2":      uni(ks[3], (2, D0), s1),
        "word_context": uni(ks[4], (1, D0), s1),
    }
    s2 = 1.0 / math.sqrt(H)
    gat2 = {                                       # in=D0, out=H, transfer=True
        "weight":  uni(ks[5], (D0, H), s2),
        "weight2": uni(ks[6], (D0, H), s2),
        "weight3": uni(ks[7], (H, H), s2),
        "a":       uni(ks[8], (2, H), s2),
        "a2":      uni(ks[9], (2, H), s2),
        "word_context": uni(ks[10], (1, H), s2),
    }
    sH = 1.0 / math.sqrt(H)
    return {
        # TODO(synk): original loads Glove/pickle vocab; replaced by deterministic random table
        "embedding": jax.random.normal(ks[11], (n_vocab + 1, D0), jnp.float32),
        "gat1": gat1,
        "gat2": gat2,
        "ln_gamma": uni(ks[12], (H,), sH),
        "ln_beta":  uni(ks[13], (H,), sH),
    }


if __name__ == "__main__":
    B, Nn, Ne, D0, H = 2, 16, 8, 32, 32   # batch, max_n_node, max_n_edge, init_feat, hidden
    n_vocab = 50

    key = jax.random.PRNGKey(0)
    k_param, k_items, k_adj = jax.random.split(key, 3)
    params = init_params(k_param, n_vocab, D0, H)

    items = jax.random.randint(k_items, (B, Nn), 0, n_vocab + 1, dtype=jnp.int32)
    HT = (jax.random.uniform(k_adj, (B, Ne, Nn)) < 0.4).astype(jnp.float32)
    alias_inputs = jnp.tile(jnp.arange(Nn, dtype=jnp.int32), (B, 1))
    node_masks = (jnp.arange(Nn)[None, :] < jnp.array([[10], [13]])).astype(jnp.float32)

    forward = jax.jit(hypergraph_model_forward)
    out = jax.block_until_ready(forward(params, alias_inputs, HT, items, node_masks))

    ref = _reference_forward(params, alias_inputs, HT, items, node_masks)
    assert out.shape == (B, H)
    assert not bool(jnp.any(jnp.isnan(out)))
    assert bool(jnp.allclose(out, ref, atol=5e-2, rtol=5e-2)), \
        float(jnp.max(jnp.abs(out - ref)))
    print("KERNEL_OK")
</pallas_src>

<mosaic_0001>
module attributes {stable_mosaic.version = 11 : i64} {
  func.func private @main(%arg0: i32) attributes {dimension_semantics = [#tpu.dimension_semantics<core_parallel>], iteration_bounds = array<i64: 2>, tpu.core_type = #tpu.core_type<sc_scalar_subcore>, window_params = []} {
    return
  }
}

module attributes {stable_mosaic.version = 11 : i64} {
  func.func private @main(%arg0: i32) attributes {dimension_semantics = [#tpu.dimension_semantics<core_parallel>], iteration_bounds = array<i64: 2>, tpu.core_type = #tpu.core_type<sc_scalar_subcore>, window_params = []} {
    return
  }
}

module attributes {stable_mosaic.version = 11 : i64} {
  func.func @_fused_forward_kernel(%arg0: i32, %arg1: memref<2x16x32xf32, #tpu.memory_space<vmem>>, %arg2: memref<2x8x16xf32, #tpu.memory_space<vmem>>, %arg3: memref<2x16x1xf32, #tpu.memory_space<vmem>>, %arg4: memref<32x2xf32, #tpu.memory_space<vmem>>, %arg5: memref<32x1xf32, #tpu.memory_space<vmem>>, %arg6: memref<32x34xf32, #tpu.memory_space<vmem>>, %arg7: memref<32x1xf32, #tpu.memory_space<vmem>>, %arg8: memref<2xf32, #tpu.memory_space<smem>>, %arg9: memref<1x32xf32, #tpu.memory_space<vmem>>, %arg10: memref<1x32xf32, #tpu.memory_space<vmem>>, %arg11: memref<2x32xf32, #tpu.memory_space<vmem>>) attributes {dimension_semantics = [#tpu.dimension_semantics<parallel>], iteration_bounds = array<i64: 1>, scalar_prefetch = 0 : i64, scratch_operands = 0 : i64, tpu.core_type = #tpu.core_type<tc>, window_params = [{transform_indices = @transform_0, window_bounds = array<i64: 2, 16, 32>}, {transform_indices = @transform_1, window_bounds = array<i64: 2, 8, 16>}, {transform_indices = @transform_2, window_bounds = array<i64: 2, 16, 1>}, {pipeline_mode = #tpu.pipeline_mode<synchronous>, transform_indices = @transform_3, window_bounds = array<i64: 32, 2>}, {pipeline_mode = #tpu.pipeline_mode<synchronous>, transform_indices = @transform_4, window_bounds = array<i64: 32, 1>}, {pipeline_mode = #tpu.pipeline_mode<synchronous>, transform_indices = @transform_5, window_bounds = array<i64: 32, 34>}, {pipeline_mode = #tpu.pipeline_mode<synchronous>, transform_indices = @transform_6, window_bounds = array<i64: 32, 1>}, {transform_indices = @transform_7, window_bounds = array<i64: 2>}, {pipeline_mode = #tpu.pipeline_mode<synchronous>, transform_indices = @transform_8, window_bounds = array<i64: 1, 32>}, {pipeline_mode = #tpu.pipeline_mode<synchronous>, transform_indices = @transform_9, window_bounds = array<i64: 1, 32>}, {transform_indices = @transform_10, window_bounds = array<i64: 2, 32>}]} {
    %c0 = arith.constant 0 : index
    %c0_0 = arith.constant 0 : index
    %c0_1 = arith.constant 0 : index
    %0 = vector.load %arg1[%c0, %c0_0, %c0_1] : memref<2x16x32xf32, #tpu.memory_space<vmem>>, vector<2x16x32xf32>
    %c0_2 = arith.constant 0 : index
    %c0_3 = arith.constant 0 : index
    %c0_4 = arith.constant 0 : index
    %1 = vector.load %arg2[%c0_2, %c0_3, %c0_4] : memref<2x8x16xf32, #tpu.memory_space<vmem>>, vector<2x8x16xf32>
    %cst = arith.constant 0.000000e+00 : f32
    %2 = vector.broadcast %cst : f32 to vector<2x8x16xf32>
    %3 = arith.cmpf ogt, %1, %2 : vector<2x8x16xf32>
    %cst_5 = arith.constant 0.000000e+00 : f32
    %cst_6 = arith.constant -9.000000e+15 : f32
    %4 = vector.broadcast %cst_5 : f32 to vector<2x8x16xf32>
    %5 = vector.broadcast %cst_6 : f32 to vector<2x8x16xf32>
    %6 = arith.select %3, %4, %5 : vector<2x8x16xi1>, vector<2x8x16xf32>
    %7 = tpu.transpose %6, [0, 2, 1] : vector<2x8x16xf32> -> vector<2x16x8xf32>
    %8 = vector.shape_cast %0 : vector<2x16x32xf32> to vector<32x32xf32>
    %9 = arith.truncf %8 : vector<32x32xf32> to vector<32x32xbf16>
    %c0_7 = arith.constant 0 : index
    %c0_8 = arith.constant 0 : index
    %10 = vector.load %arg4[%c0_7, %c0_8] : memref<32x2xf32, #tpu.memory_space<vmem>>, vector<32x2xf32>
    %11 = arith.truncf %10 : vector<32x2xf32> to vector<32x2xbf16>
    %cst_9 = arith.constant dense<0.000000e+00> : vector<32x2xf32>
    %12 = tpu.matmul %9, %11, %cst_9 {dimension_numbers = #tpu.dot_dimension_numbers<[1], [0], [0], [1], [0, 0, 1, 1], [], []>} : vector<32x32xbf16>, vector<32x2xbf16>, vector<32x2xf32> -> vector<32x2xf32>
    %13 = vector.shape_cast %12 : vector<32x2xf32> to vector<2x16x2xf32>
    %c0_10 = arith.constant 0 : index
    %c0_11 = arith.constant 0 : index
    %14 = vector.load %arg5[%c0_10, %c0_11] : memref<32x1xf32, #tpu.memory_space<vmem>>, vector<32x1xf32>
    %c0_12 = arith.constant 0 : index
    %15 = memref.load %arg8[%c0_12] : memref<2xf32, #tpu.memory_space<smem>>
    %16 = vector.extract_strided_slice %13 {offsets = [0, 0, 0], sizes = [2, 16, 1], strides = [1, 1, 1]} : vector<2x16x2xf32> to vector<2x16x1xf32>
    %17 = tpu.transpose %16, [0, 2, 1] : vector<2x16x1xf32> -> vector<2x1x16xf32>
    %18 = vector.broadcast %15 : f32 to vector<2x1x16xf32>
    %19 = arith.addf %17, %18 : vector<2x1x16xf32>
    %cst_13 = arith.constant 0.000000e+00 : f32
    %20 = vector.broadcast %cst_13 : f32 to vector<2x1x16xf32>
    %21 = arith.cmpf ogt, %19, %20 : vector<2x1x16xf32>
    %cst_14 = arith.constant 2.000000e-01 : f32
    %22 = vector.broadcast %cst_14 : f32 to vector<2x1x16xf32>
    %23 = arith.mulf %22, %19 : vector<2x1x16xf32>
    %24 = arith.select %21, %19, %23 : vector<2x1x16xi1>, vector<2x1x16xf32>
    %25 = vector.broadcast %24 : vector<2x1x16xf32> to vector<2x8x16xf32>
    %26 = arith.addf %25, %6 : vector<2x8x16xf32>
    %cst_15 = arith.constant dense<0xFF800000> : vector<2x8xf32>
    %27 = vector.multi_reduction <maximumf>, %26, %cst_15 [2] : vector<2x8x16xf32> to vector<2x8xf32>
    %28 = vector.shape_cast %27 : vector<2x8xf32> to vector<2x8x1xf32>
    %29 = vector.broadcast %28 : vector<2x8x1xf32> to vector<2x8x16xf32>
    %30 = arith.subf %26, %29 : vector<2x8x16xf32>
    %31 = math.exp %30 : vector<2x8x16xf32>
    %cst_16 = arith.constant dense<0.000000e+00> : vector<2x8xf32>
    %32 = vector.multi_reduction <add>, %31, %cst_16 [2] : vector<2x8x16xf32> to vector<2x8xf32>
    %33 = vector.shape_cast %32 : vector<2x8xf32> to vector<2x8x1xf32>
    %34 = tpu.reciprocal %33 {approx = true} : vector<2x8x1xf32> -> vector<2x8x1xf32>
    %35 = vector.broadcast %34 : vector<2x8x1xf32> to vector<2x8x16xf32>
    %36 = arith.mulf %31, %35 : vector<2x8x16xf32>
    %37 = arith.truncf %36 : vector<2x8x16xf32> to vector<2x8x16xbf16>
    %38 = arith.truncf %0 : vector<2x16x32xf32> to vector<2x16x32xbf16>
    "tpu.trace_start"() <{level = 10 : i32, message = "ben,bnd->bed"}> : () -> ()
    %cst_17 = arith.constant dense<0.000000e+00> : vector<2x8x32xf32>
    %39 = tpu.matmul %37, %38, %cst_17 {dimension_numbers = #tpu.dot_dimension_numbers<[2], [1], [1], [2], [0, 0, 0, 1, 1, 2], [0], [0]>} : vector<2x8x16xbf16>, vector<2x16x32xbf16>, vector<2x8x32xf32> -> vector<2x8x32xf32>
    "tpu.trace_stop"() : () -> ()
    %40 = vector.extract_strided_slice %13 {offsets = [0, 0, 1], sizes = [2, 16, 1], strides = [1, 1, 1]} : vector<2x16x2xf32> to vector<2x16x1xf32>
    %41 = vector.shape_cast %39 : vector<2x8x32xf32> to vector<16x32xf32>
    %42 = arith.truncf %41 : vector<16x32xf32> to vector<16x32xbf16>
    %43 = arith.truncf %14 : vector<32x1xf32> to vector<32x1xbf16>
    %cst_18 = arith.constant dense<0.000000e+00> : vector<16x1xf32>
    %44 = tpu.matmul %42, %43, %cst_18 {dimension_numbers = #tpu.dot_dimension_numbers<[1], [0], [0], [1], [0, 0, 1, 1], [], []>} : vector<16x32xbf16>, vector<32x1xbf16>, vector<16x1xf32> -> vector<16x1xf32>
    %45 = vector.shape_cast %44 : vector<16x1xf32> to vector<2x8x1xf32>
    %46 = tpu.transpose %45, [0, 2, 1] : vector<2x8x1xf32> -> vector<2x1x8xf32>
    %47 = vector.broadcast %40 : vector<2x16x1xf32> to vector<2x16x8xf32>
    %48 = vector.broadcast %46 : vector<2x1x8xf32> to vector<2x16x8xf32>
    %49 = arith.addf %47, %48 : vector<2x16x8xf32>
    %cst_19 = arith.constant 0.000000e+00 : f32
    %50 = vector.broadcast %cst_19 : f32 to vector<2x16x8xf32>
    %51 = arith.cmpf ogt, %49, %50 : vector<2x16x8xf32>
    %cst_20 = arith.constant 2.000000e-01 : f32
    %52 = vector.broadcast %cst_20 : f32 to vector<2x16x8xf32>
    %53 = arith.mulf %52, %49 : vector<2x16x8xf32>
    %54 = arith.select %51, %49, %53 : vector<2x16x8xi1>, vector<2x16x8xf32>
    %55 = arith.addf %54, %7 : vector<2x16x8xf32>
    %cst_21 = arith.constant dense<0xFF800000> : vector<2x16xf32>
    %56 = vector.multi_reduction <maximumf>, %55, %cst_21 [2] : vector<2x16x8xf32> to vector<2x16xf32>
    %57 = vector.shape_cast %56 : vector<2x16xf32> to vector<2x16x1xf32>
    %58 = vector.broadcast %57 : vector<2x16x1xf32> to vector<2x16x8xf32>
    %59 = arith.subf %55, %58 : vector<2x16x8xf32>
    %60 = math.exp %59 : vector<2x16x8xf32>
    %cst_22 = arith.constant dense<0.000000e+00> : vector<2x16xf32>
    %61 = vector.multi_reduction <add>, %60, %cst_22 [2] : vector<2x16x8xf32> to vector<2x16xf32>
    %62 = vector.shape_cast %61 : vector<2x16xf32> to vector<2x16x1xf32>
    %63 = tpu.reciprocal %62 {approx = true} : vector<2x16x1xf32> -> vector<2x16x1xf32>
    %64 = vector.broadcast %63 : vector<2x16x1xf32> to vector<2x16x8xf32>
    %65 = arith.mulf %60, %64 : vector<2x16x8xf32>
    %66 = arith.truncf %65 : vector<2x16x8xf32> to vector<2x16x8xbf16>
    %67 = arith.truncf %39 : vector<2x8x32xf32> to vector<2x8x32xbf16>
    "tpu.trace_start"() <{level = 10 : i32, message = "bne,bed->bnd"}> : () -> ()
    %cst_23 = arith.constant dense<0.000000e+00> : vector<2x16x32xf32>
    %68 = tpu.matmul %66, %67, %cst_23 {dimension_numbers = #tpu.dot_dimension_numbers<[2], [1], [1], [2], [0, 0, 0, 1, 1, 2], [0], [0]>} : vector<2x16x8xbf16>, vector<2x8x32xbf16>, vector<2x16x32xf32> -> vector<2x16x32xf32>
    %cst_24 = arith.constant 0.000000e+00 : f32
    "tpu.trace_stop"() : () -> ()
    %69 = vector.broadcast %cst_24 : f32 to vector<2x16x32xf32>
    %70 = arith.cmpf ogt, %68, %69 : vector<2x16x32xf32>
    %71 = math.exp %68 : vector<2x16x32xf32>
    %cst_25 = arith.constant 1.000000e+00 : f32
    %72 = vector.broadcast %cst_25 : f32 to vector<2x16x32xf32>
    %73 = arith.subf %71, %72 : vector<2x16x32xf32>
    %74 = arith.select %70, %68, %73 : vector<2x16x32xi1>, vector<2x16x32xf32>
    %75 = vector.shape_cast %74 : vector<2x16x32xf32> to vector<32x32xf32>
    %76 = arith.truncf %75 : vector<32x32xf32> to vector<32x32xbf16>
    %c0_26 = arith.constant 0 : index
    %c0_27 = arith.constant 0 : index
    %77 = vector.load %arg6[%c0_26, %c0_27] : memref<32x34xf32, #tpu.memory_space<vmem>>, vector<32x34xf32>
    %78 = arith.truncf %77 : vector<32x34xf32> to vector<32x34xbf16>
    %cst_28 = arith.constant dense<0.000000e+00> : vector<32x34xf32>
    %79 = tpu.matmul %76, %78, %cst_28 {dimension_numbers = #tpu.dot_dimension_numbers<[1], [0], [0], [1], [0, 0, 1, 1], [], []>} : vector<32x32xbf16>, vector<32x34xbf16>, vector<32x34xf32> -> vector<32x34xf32>
    %80 = vector.extract_strided_slice %79 {offsets = [0, 0], sizes = [32, 32], strides = [1, 1]} : vector<32x34xf32> to vector<32x32xf32>
    %81 = vector.shape_cast %80 : vector<32x32xf32> to vector<2x16x32xf32>
    %82 = vector.extract_strided_slice %79 {offsets = [0, 32], sizes = [32, 2], strides = [1, 1]} : vector<32x34xf32> to vector<32x2xf32>
    %83 = vector.shape_cast %82 : vector<32x2xf32> to vector<2x16x2xf32>
    %c0_29 = arith.constant 0 : index
    %c0_30 = arith.constant 0 : index
    %84 = vector.load %arg7[%c0_29, %c0_30] : memref<32x1xf32, #tpu.memory_space<vmem>>, vector<32x1xf32>
    %c1 = arith.constant 1 : index
    %85 = memref.load %arg8[%c1] : memref<2xf32, #tpu.memory_space<smem>>
    %86 = vector.extract_strided_slice %83 {offsets = [0, 0, 0], sizes = [2, 16, 1], strides = [1, 1, 1]} : vector<2x16x2xf32> to vector<2x16x1xf32>
    %87 = tpu.transpose %86, [0, 2, 1] : vector<2x16x1xf32> -> vector<2x1x16xf32>
    %88 = vector.broadcast %85 : f32 to vector<2x1x16xf32>
    %89 = arith.addf %87, %88 : vector<2x1x16xf32>
    %cst_31 = arith.constant 0.000000e+00 : f32
    %90 = vector.broadcast %cst_31 : f32 to vector<2x1x16xf32>
    %91 = arith.cmpf ogt, %89, %90 : vector<2x1x16xf32>
    %cst_32 = arith.constant 2.000000e-01 : f32
    %92 = vector.broadcast %cst_32 : f32 to vector<2x1x16xf32>
    %93 = arith.mulf %92, %89 : vector<2x1x16xf32>
    %94 = arith.select %91, %89, %93 : vector<2x1x16xi1>, vector<2x1x16xf32>
    %95 = vector.broadcast %94 : vector<2x1x16xf32> to vector<2x8x16xf32>
    %96 = arith.addf %95, %6 : vector<2x8x16xf32>
    %cst_33 = arith.constant dense<0xFF800000> : vector<2x8xf32>
    %97 = vector.multi_reduction <maximumf>, %96, %cst_33 [2] : vector<2x8x16xf32> to vector<2x8xf32>
    %98 = vector.shape_cast %97 : vector<2x8xf32> to vector<2x8x1xf32>
    %99 = vector.broadcast %98 : vector<2x8x1xf32> to vector<2x8x16xf32>
    %100 = arith.subf %96, %99 : vector<2x8x16xf32>
    %101 = math.exp %100 : vector<2x8x16xf32>
    %cst_34 = arith.constant dense<0.000000e+00> : vector<2x8xf32>
    %102 = vector.multi_reduction <add>, %101, %cst_34 [2] : vector<2x8x16xf32> to vector<2x8xf32>
    %103 = vector.shape_cast %102 : vector<2x8xf32> to vector<2x8x1xf32>
    %104 = tpu.reciprocal %103 {approx = true} : vector<2x8x1xf32> -> vector<2x8x1xf32>
    %105 = vector.broadcast %104 : vector<2x8x1xf32> to vector<2x8x16xf32>
    %106 = arith.mulf %101, %105 : vector<2x8x16xf32>
    %107 = arith.truncf %106 : vector<2x8x16xf32> to vector<2x8x16xbf16>
    %108 = arith.truncf %81 : vector<2x16x32xf32> to vector<2x16x32xbf16>
    "tpu.trace_start"() <{level = 10 : i32, message = "ben,bnd->bed"}> : () -> ()
    %cst_35 = arith.constant dense<0.000000e+00> : vector<2x8x32xf32>
    %109 = tpu.matmul %107, %108, %cst_35 {dimension_numbers = #tpu.dot_dimension_numbers<[2], [1], [1], [2], [0, 0, 0, 1, 1, 2], [0], [0]>} : vector<2x8x16xbf16>, vector<2x16x32xbf16>, vector<2x8x32xf32> -> vector<2x8x32xf32>
    "tpu.trace_stop"() : () -> ()
    %110 = vector.extract_strided_slice %83 {offsets = [0, 0, 1], sizes = [2, 16, 1], strides = [1, 1, 1]} : vector<2x16x2xf32> to vector<2x16x1xf32>
    %111 = vector.shape_cast %109 : vector<2x8x32xf32> to vector<16x32xf32>
    %112 = arith.truncf %111 : vector<16x32xf32> to vector<16x32xbf16>
    %113 = arith.truncf %84 : vector<32x1xf32> to vector<32x1xbf16>
    %cst_36 = arith.constant dense<0.000000e+00> : vector<16x1xf32>
    %114 = tpu.matmul %112, %113, %cst_36 {dimension_numbers = #tpu.dot_dimension_numbers<[1], [0], [0], [1], [0, 0, 1, 1], [], []>} : vector<16x32xbf16>, vector<32x1xbf16>, vector<16x1xf32> -> vector<16x1xf32>
    %115 = vector.shape_cast %114 : vector<16x1xf32> to vector<2x8x1xf32>
    %116 = tpu.transpose %115, [0, 2, 1] : vector<2x8x1xf32> -> vector<2x1x8xf32>
    %117 = vector.broadcast %110 : vector<2x16x1xf32> to vector<2x16x8xf32>
    %118 = vector.broadcast %116 : vector<2x1x8xf32> to vector<2x16x8xf32>
    %119 = arith.addf %117, %118 : vector<2x16x8xf32>
    %cst_37 = arith.constant 0.000000e+00 : f32
    %120 = vector.broadcast %cst_37 : f32 to vector<2x16x8xf32>
    %121 = arith.cmpf ogt, %119, %120 : vector<2x16x8xf32>
    %cst_38 = arith.constant 2.000000e-01 : f32
    %122 = vector.broadcast %cst_38 : f32 to vector<2x16x8xf32>
    %123 = arith.mulf %122, %119 : vector<2x16x8xf32>
    %124 = arith.select %121, %119, %123 : vector<2x16x8xi1>, vector<2x16x8xf32>
    %125 = arith.addf %124, %7 : vector<2x16x8xf32>
    %cst_39 = arith.constant dense<0xFF800000> : vector<2x16xf32>
    %126 = vector.multi_reduction <maximumf>, %125, %cst_39 [2] : vector<2x16x8xf32> to vector<2x16xf32>
    %127 = vector.shape_cast %126 : vector<2x16xf32> to vector<2x16x1xf32>
    %128 = vector.broadcast %127 : vector<2x16x1xf32> to vector<2x16x8xf32>
    %129 = arith.subf %125, %128 : vector<2x16x8xf32>
    %130 = math.exp %129 : vector<2x16x8xf32>
    %cst_40 = arith.constant dense<0.000000e+00> : vector<2x16xf32>
    %131 = vector.multi_reduction <add>, %130, %cst_40 [2] : vector<2x16x8xf32> to vector<2x16xf32>
    %132 = vector.shape_cast %131 : vector<2x16xf32> to vector<2x16x1xf32>
    %133 = tpu.reciprocal %132 {approx = true} : vector<2x16x1xf32> -> vector<2x16x1xf32>
    %134 = vector.broadcast %133 : vector<2x16x1xf32> to vector<2x16x8xf32>
    %135 = arith.mulf %130, %134 : vector<2x16x8xf32>
    %136 = arith.truncf %135 : vector<2x16x8xf32> to vector<2x16x8xbf16>
    %137 = arith.truncf %109 : vector<2x8x32xf32> to vector<2x8x32xbf16>
    "tpu.trace_start"() <{level = 10 : i32, message = "bne,bed->bnd"}> : () -> ()
    %cst_41 = arith.constant dense<0.000000e+00> : vector<2x16x32xf32>
    %138 = tpu.matmul %136, %137, %cst_41 {dimension_numbers = #tpu.dot_dimension_numbers<[2], [1], [1], [2], [0, 0, 0, 1, 1, 2], [0], [0]>} : vector<2x16x8xbf16>, vector<2x8x32xbf16>, vector<2x16x32xf32> -> vector<2x16x32xf32>
    "tpu.trace_stop"() : () -> ()
    %c0_42 = arith.constant 0 : index
    %c0_43 = arith.constant 0 : index
    %c0_44 = arith.constant 0 : index
    %139 = vector.load %arg3[%c0_42, %c0_43, %c0_44] : memref<2x16x1xf32, #tpu.memory_space<vmem>>, vector<2x16x1xf32>
    %140 = vector.broadcast %139 : vector<2x16x1xf32> to vector<2x16x32xf32>
    %141 = arith.mulf %138, %140 : vector<2x16x32xf32>
    %cst_45 = arith.constant dense<0.000000e+00> : vector<2x32xf32>
    %142 = vector.multi_reduction <add>, %141, %cst_45 [1] : vector<2x16x32xf32> to vector<2x32xf32>
    %cst_46 = arith.constant dense<0.000000e+00> : vector<2xf32>
    %143 = vector.multi_reduction <add>, %142, %cst_46 [1] : vector<2x32xf32> to vector<2xf32>
    %144 = vector.shape_cast %143 : vector<2xf32> to vector<2x1xf32>
    %cst_47 = arith.constant 3.200000e+01 : f32
    %145 = vector.broadcast %cst_47 : f32 to vector<2x1xf32>
    %146 = arith.divf %144, %145 : vector<2x1xf32>
    %147 = vector.broadcast %146 : vector<2x1xf32> to vector<2x32xf32>
    %148 = arith.subf %142, %147 : vector<2x32xf32>
    %149 = arith.mulf %148, %148 : vector<2x32xf32>
    %cst_48 = arith.constant dense<0.000000e+00> : vector<2xf32>
    %150 = vector.multi_reduction <add>, %149, %cst_48 [1] : vector<2x32xf32> to vector<2xf32>
    %151 = vector.shape_cast %150 : vector<2xf32> to vector<2x1xf32>
    %cst_49 = arith.constant 3.200000e+01 : f32
    %152 = vector.broadcast %cst_49 : f32 to vector<2x1xf32>
    %153 = arith.divf %151, %152 : vector<2x1xf32>
    %154 = vector.broadcast %146 : vector<2x1xf32> to vector<2x32xf32>
    %155 = arith.subf %142, %154 : vector<2x32xf32>
    %cst_50 = arith.constant 9.99999997E-7 : f32
    %156 = vector.broadcast %cst_50 : f32 to vector<2x1xf32>
    %157 = arith.addf %153, %156 : vector<2x1xf32>
    %158 = math.rsqrt %157 : vector<2x1xf32>
    %159 = vector.broadcast %158 : vector<2x1xf32> to vector<2x32xf32>
    %160 = arith.mulf %155, %159 : vector<2x32xf32>
    %c0_51 = arith.constant 0 : index
    %c0_52 = arith.constant 0 : index
    %161 = vector.load %arg9[%c0_51, %c0_52] : memref<1x32xf32, #tpu.memory_space<vmem>>, vector<1x32xf32>
    %162 = vector.broadcast %161 : vector<1x32xf32> to vector<2x32xf32>
    %163 = arith.mulf %160, %162 : vector<2x32xf32>
    %c0_53 = arith.constant 0 : index
    %c0_54 = arith.constant 0 : index
    %164 = vector.load %arg10[%c0_53, %c0_54] : memref<1x32xf32, #tpu.memory_space<vmem>>, vector<1x32xf32>
    %165 = vector.broadcast %164 : vector<1x32xf32> to vector<2x32xf32>
    %166 = arith.addf %163, %165 : vector<2x32xf32>
    %c0_55 = arith.constant 0 : index
    %c0_56 = arith.constant 0 : index
    %167 = vector.load %arg11[%c0_55, %c0_56] : memref<2x32xf32, #tpu.memory_space<vmem>>, vector<2x32xf32>
    tpu.vector_store %arg11[%c0_55, %c0_56], %166 {strides = array<i32>} : memref<2x32xf32, #tpu.memory_space<vmem>>, vector<2x32xf32>,
    return
  }
  func.func @transform_0(%arg0: i32) -> (i32, i32, i32) {
    %c0_i32 = arith.constant 0 : i32
    %c0_i32_0 = arith.constant 0 : i32
    %c0_i32_1 = arith.constant 0 : i32
    return %arg0, %c0_i32, %c0_i32_0 : i32, i32, i32
  }
  func.func @transform_1(%arg0: i32) -> (i32, i32, i32) {
    %c0_i32 = arith.constant 0 : i32
    %c0_i32_0 = arith.constant 0 : i32
    %c0_i32_1 = arith.constant 0 : i32
    return %arg0, %c0_i32, %c0_i32_0 : i32, i32, i32
  }
  func.func @transform_2(%arg0: i32) -> (i32, i32, i32) {
    %c0_i32 = arith.constant 0 : i32
    %c0_i32_0 = arith.constant 0 : i32
    %c0_i32_1 = arith.constant 0 : i32
    return %arg0, %c0_i32, %c0_i32_0 : i32, i32, i32
  }
  func.func @transform_3(%arg0: i32) -> (i32, i32) {
    %c0_i32 = arith.constant 0 : i32
    %c0_i32_0 = arith.constant 0 : i32
    %c0_i32_1 = arith.constant 0 : i32
    return %c0_i32, %c0_i32_0 : i32, i32
  }
  func.func @transform_4(%arg0: i32) -> (i32, i32) {
    %c0_i32 = arith.constant 0 : i32
    %c0_i32_0 = arith.constant 0 : i32
    %c0_i32_1 = arith.constant 0 : i32
    return %c0_i32, %c0_i32_0 : i32, i32
  }
  func.func @transform_5(%arg0: i32) -> (i32, i32) {
    %c0_i32 = arith.constant 0 : i32
    %c0_i32_0 = arith.constant 0 : i32
    %c0_i32_1 = arith.constant 0 : i32
    return %c0_i32, %c0_i32_0 : i32, i32
  }
  func.func @transform_6(%arg0: i32) -> (i32, i32) {
    %c0_i32 = arith.constant 0 : i32
    %c0_i32_0 = arith.constant 0 : i32
    %c0_i32_1 = arith.constant 0 : i32
    return %c0_i32, %c0_i32_0 : i32, i32
  }
  func.func @transform_7(%arg0: i32) -> i32 {
    %c0_i32 = arith.constant 0 : i32
    %c0_i32_0 = arith.constant 0 : i32
    return %c0_i32 : i32
  }
  func.func @transform_8(%arg0: i32) -> (i32, i32) {
    %c0_i32 = arith.constant 0 : i32
    %c0_i32_0 = arith.constant 0 : i32
    %c0_i32_1 = arith.constant 0 : i32
    return %c0_i32, %c0_i32_0 : i32, i32
  }
  func.func @transform_9(%arg0: i32) -> (i32, i32) {
    %c0_i32 = arith.constant 0 : i32
    %c0_i32_0 = arith.constant 0 : i32
    %c0_i32_1 = arith.constant 0 : i32
    return %c0_i32, %c0_i32_0 : i32, i32
  }
  func.func @transform_10(%arg0: i32) -> (i32, i32) {
    %c0_i32 = arith.constant 0 : i32
    %c0_i32_0 = arith.constant 0 : i32
    return %arg0, %c0_i32 : i32, i32
  }
}

</mosaic_0001>

<bundles_post_ra>
// kernel: hypergraph_model_forward.1
= control target key start
LH: loop header
LB: loop body
LE: loop exit
PB: predicated region body
PF: predicated region fallthrough
CT: control target
= control target key end

     0   :  { %15 = vsyncpa [#allocation4], 0  ;;  %s1944_s0 = inlined_call_operand.vmem [shape: f32[2,16,32], index: 0, kind: input, shape index: {}]   ;;  %s1945_s1 = inlined_call_operand.vmem [shape: f32[2,8,16], index: 1, kind: input, shape index: {}]   ;;  %s1946_s2 = inlined_call_operand.vmem [shape: f32[2,16,1], index: 2, kind: input, shape index: {}]   ;;  %s1947_s3 = inlined_call_operand.vmem [shape: f32[32,2], index: 3, kind: input, shape index: {}]   ;;  %s1948_s4 = inlined_call_operand.vmem [shape: f32[32,1], index: 4, kind: input, shape index: {}]   ;;  %s1949_s5 = inlined_call_operand.vmem [shape: f32[32,34], index: 5, kind: input, shape index: {}]   ;;  %s1950_s6 = inlined_call_operand.vmem [shape: f32[32,1], index: 6, kind: input, shape index: {}]   ;;  %s1951_s7 = inlined_call_operand.vmem [shape: f32[2], index: 7, kind: input, shape index: {}]   ;;  %s1952_s8 = inlined_call_operand.vmem [shape: f32[1,32], index: 8, kind: input, shape index: {}]   ;;  %s1953_s9 = inlined_call_operand.vmem [shape: f32[1,32], index: 9, kind: input, shape index: {}]   ;;  %s1954_s10 = inlined_call_operand.hbm [shape: f32[2,32], index: 10, kind: output, shape index: {}]  }
   0x1   :  { %16 = vsyncpa [#allocation3], 0  ;;  %s37_s15 = sshll.u32 %s1951_s7, 4  ;;  %s38_s15 = int_to_ptr.vmem [resolvable:$true] %s37_s15 }
   0x2   :  { %s1611_s16 = scalar_lea.vmem %s38_s15, 16  ;;  %p1616_p1 = scmp.lt.s32.totalorder %s38_s15, %s38_s15 }
   0x3   :  { %p1612_p0 = scmp.ne.s32.totalorder %s38_s15, %s1611_s16  ;;  %p1617_p2 = scmp.lt.s32.totalorder %s1611_s16, %s1611_s16 }
   0x5   :  { %p1618_p3 = por %p1617_p2, %p1616_p1 }
   0x7   :  { %p1619_p4 = pnand %p1618_p3, %p1612_p0 }
   0x9   :  { %1622 = shalt.err (!%p1619_p4)
}
   0xa   :  { %s1649_s17 = smov [#allocation2]  }
   0xb   :  { %40 = dma.vmem_to_smem %s38_s15, 16, %s1649_s17, [#allocation4]  }
   0xc   :  { %1645 = dma.done.wait [#allocation4], 16  }
   0xd   :  { %1646 = vsyncadd [#allocation4], 4294967280 }
   0xe   :  { %48 = sfence }
   0xf   :  { %v126_v0 = vld [vmem:[%s1947_s3] sm:$0xff]  ;;  %v127_v1 = vld [vmem:[%s1947_s3 + $0x8] sm:$0xff]  ;;  %v128_v2 = vld [vmem:[%s1947_s3 + $0x10] sm:$0xff]  ;;  %vm132_vm0 = vcmask 261120   ;;  %v1650_v16 = vmov 1   ;;  %v266_v17 = vlaneseq  ;;  %vm276_vm5 = vcmask 130048  }
  0x10   :  { %v130_v3 = vpack.c.bf16 %v127_v1, %v126_v0  ;;  %v129_v4 = vld [vmem:[%s1947_s3 + $0x18] sm:$0xff]  ;;  %v50_v5 = vld [vmem:[%s1944_s0] sm:$0xff]  ;;  %v51_v6 = vld [vmem:[%s1944_s0 + $0x8] sm:$0xff]  ;;  %v1651_v30 = vmov -9e+15   ;;  %v1652_v50 = vmov 0.0  }
  0x11   :  { %v131_v7 = vpack.c.bf16 %v129_v4, %v128_v2  ;;  %v1734_v8 = vpack.c.bf16 %v51_v6, %v50_v5  ;;  %v52_v9 = vld [vmem:[%s1944_s0 + $0x10] sm:$0xff]  ;;  %v53_v10 = vld [vmem:[%s1944_s0 + $0x18] sm:$0xff]  ;;  %s192_s0 = sld [smem:[#allocation2]]  ;;  %v267_v19 = vshrl.u32 %v266_v17, 7  ;;  %v55_v20 = vld [vmem:[%s1945_s1 + $0x8] sm:$0xff]  ;;  %1466 = vmatprep.subr.bf16.mxu1 %v1652_v50  ;;  %vm1653_vm6 = vmmov 0  }
  0x12   :  { %1458 = vmatprep.subr.bf16.mxu0 %v130_v3  ;;  %v1744_v11 = vpack.c.bf16 %v53_v10, %v52_v9  ;;  %v54_v22 = vld [vmem:[%s1945_s1] sm:$0xff]  ;;  %vm57_vm1 = vcmp.gt.f32.partialorder %v55_v20, 0.0  ;;  %1468 = vmatprep.mubr.msk.bf16.mxu1 %vm1653_vm6, %v1652_v50  ;;  %v189_v60 = vld [vmem:[%s1948_s4 + $0x8] sm:$0xff]  ;;  %v190_v62 = vld [vmem:[%s1948_s4 + $0x10] sm:$0xff]  ;;  %vm598_vm7 = vcmask 1043456   ;;  %vm546_vm12 = vcmask 64512  }
  0x13   :  { %1459 = vmatpush3.bf16.msra.mxu0 %v130_v3  ;;  %1462 = vmatprep.mubr.msk.bf16.mxu0 %vm132_vm0, %v1734_v8  ;;  %v1757_v26 = vsub.s32 0, %v267_v19  ;;  %vm56_vm3 = vcmp.gt.f32.partialorder %v54_v22, 0.0  ;;  %v1759_v31 = vsel %vm57_vm1, 0.0, %v1651_v30  ;;  %v188_v59 = vld [vmem:[%s1948_s4] sm:$0xff]  ;;  %v191_v63 = vld [vmem:[%s1948_s4 + $0x18] sm:$0xff]  ;;  %s1420_s29 = sld [smem:[#allocation2 + $0x1]] }
  0x14   :  { %1460 = vmatprep.subr.bf16.mxu0 %v131_v7  ;;  %v1762_v34 = vsel %vm56_vm3, 0.0, %v1651_v30  ;;  %1467 = vmatpush3.bf16.msra.mxu1 %v1734_v8  ;;  %v388_v61 = vpack.c.bf16 %v189_v60, %v188_v59  ;;  %v389_v0 = vpack.c.bf16 %v191_v63, %v190_v62  ;;  %s1657_s23 = smov [#allocation5]  }
  0x15   :  { %1472 = vmatprep.subr.bf16.mxu1 %v1652_v50  ;;  %s1398_s24 = sshll.u32 %s1657_s23, 4  ;;  %s1399_s24 = int_to_ptr.vmem [resolvable:$true] %s1398_s24 }
  0x16   :  { %s1623_s25 = scalar_lea.vmem %s1399_s24, 32  ;;  %p1628_p6 = scmp.lt.s32.totalorder %s1399_s24, %s1399_s24 }
  0x17   :  { %1461 = vmatpush3.bf16.msra.mxu0 %v131_v7  ;;  %v257_v18 = vstv %s192_s0  ;;  %p1624_p5 = scmp.ne.s32.totalorder %s1399_s24, %s1623_s25  ;;  %p1629_p7 = scmp.lt.s32.totalorder %s1623_s25, %s1623_s25 }
  0x18   :  { %1478 = vmatprep.subr.bf16.mxu0 %v1652_v50 }
  0x19   :  { %p1630_p8 = por %p1629_p7, %p1628_p6 }
  0x1a   :  { %1463 = vmatmul.mubr.msk.bf16.vlgmr.msra.gmra.mrb[0].mxu0 %vm132_vm0, %v1744_v11 }
  0x1b   :  { %1482 = vmatprep.mubr.msk.bf16.mxu0 %vm1653_vm6, %v1652_v50  ;;  %1479 = vmatpush3.bf16.msra.mxu0 %v388_v61  ;;  %p1631_p9 = pnand %p1630_p8, %p1624_p5 }
  0x1c   :  { %1480 = vmatprep.subr.bf16.mxu0 %v1652_v50 }
  0x1f   :  { %1481 = vmatpush3.bf16.msra.mxu0 %v389_v0 }
  0x20   :  { %1492 = vmatprep.subr.bf16.mxu0 %v1652_v50 }
  0xed   :  { %v1464_v12 = vpop.f32.mrb[0].mxu0 }
  0xee   :  { %225 = vxpose.xlu1.b32.start [1/2] (short) (narrow) %v1464_v12, 8  ;;  %v173_v13 = vpop.f32.mrb[1].mxu0 }
  0xef   :  { %193 = vxpose.xlu0.b32.start [1/2] (short) (narrow) %v173_v13, 8  ;;  %v1748_v14 = vpop.f32.mrb[2].mxu0 }
  0xf0   :  { %v176_v15 = vpop.f32.mrb[3].mxu0 }
  0xf2   :  { %226 = vxpose.xlu1.b32.end [2/2] (short) (narrow) %v1748_v14, 8 }
  0xf3   :  { %194 = vxpose.xlu0.b32.end [2/2] (short) (narrow) %v176_v15, 8 }
 0x110   :  { %1548 = vset.pattern.permute.xlu1 %v1650_v16 }
 0x11c   :  { %1547 = vset.pattern.permute.xlu0 %v1650_v16 }
 0x16e   :  { %v241_v21 = vpop.trf.xlu1 }
 0x16f   :  { %v259_v23 = vadd.f32 %v257_v18, %v241_v21  ;;  %v209_v24 = vpop.trf.xlu0 }
 0x170   :  { %v258_v25 = vadd.f32 %v257_v18, %v209_v24 }
 0x171   :  { %vm261_vm2 = vcmp.gt.f32.partialorder %v259_v23, 0.0  ;;  %v263_v27 = vmul.f32 0.2, %v259_v23 }
 0x172   :  { %vm260_vm4 = vcmp.gt.f32.partialorder %v258_v25, 0.0  ;;  %v262_v28 = vmul.f32 0.2, %v258_v25 }
 0x173   :  { %v265_v29 = vsel %vm261_vm2, %v259_v23, %v263_v27 }
 0x174   :  { %v264_v32 = vsel %vm260_vm4, %v258_v25, %v262_v28  ;;  %v273_v33 = vrot.slane %v265_v29, %v1757_v26 }
 0x175   :  { %v269_v35 = vrot.slane %v264_v32, %v1757_v26 }
 0x176   :  { %v275_v36 = vadd.f32 %v273_v33, %v1759_v31 }
 0x177   :  { %v274_v37 = vadd.f32 %v269_v35, %v1762_v34 }
 0x178   :  { %v280_v38 = vsel %vm276_vm5, %v275_v36, -inf }
 0x179   :  { %281 = vmax.xlane.f32.xlu1 %v280_v38  ;;  %v277_v39 = vsel %vm276_vm5, %v274_v37, -inf }
 0x17a   :  { %278 = vmax.xlane.f32.xlu0 %v277_v39 }
 0x190   :  { %500 = vperm.xlu0 %1547, %v173_v13  }
 0x206   :  { %v282_v40 = vpop.xlane.xlu1 %281 }
 0x207   :  { %v284_v41 = vsub.f32 %v275_v36, %v282_v40  ;;  %v279_v42 = vpop.xlane.xlu0 %278 }
 0x208   :  { %v283_v43 = vsub.f32 %v274_v37, %v279_v42 }
 0x209   :  { %v287_v44 = vmul.f32 1.442695, %v284_v41 }
 0x20a   :  { %v285_v45 = vmul.f32 1.442695, %v283_v43 }
 0x20c   :  { %1553 = vpow2.f32 %v285_v45 }
 0x20d   :  { %1555 = vpow2.f32 %v287_v44 }
 0x20f   :  { %v501_v23 = vpop.permute.xlu0 %500 }
 0x216   :  { %v1554_v46 = vpop.eup %1553 }
 0x217   :  { %v289_v47 = vsel %vm276_vm5, %v1554_v46, 0.0  ;;  %v1556_v48 = vpop.eup %1555 }
 0x218   :  { %290 = vadd.xlane.f32.xlu1 %v289_v47  ;;  %v292_v49 = vsel %vm276_vm5, %v1556_v48, 0.0 }
 0x21c   :  { %293 = vadd.xlane.f32.xlu1 %v292_v49 }
 0x22d   :  { %505 = vperm.xlu1 %1548, %v176_v15  }
 0x231   :  { %510 = vperm.xlu1 %1548, %v1464_v12  }
 0x235   :  { %515 = vperm.xlu1 %1548, %v1748_v14  }
 0x25e   :  { %60 = vxpose.xlu1.b32.start.end [1/1] (short) (narrow) %v1762_v34, 16 }
 0x2a5   :  { %v291_v51 = vpop.xlane.xlu1 %290 }
 0x2a6   :  { %1557 = vrcp.f32 %v291_v51 }
 0x2a9   :  { %v294_v52 = vpop.xlane.xlu1 %293 }
 0x2aa   :  { %1559 = vrcp.f32 %v294_v52 }
 0x2ad   :  { %v506_v18 = vpop.permute.xlu1 %505 }
 0x2b0   :  { %v1558_v53 = vpop.eup %1557 }
 0x2b1   :  { %v297_v54 = vmul.f32 %v1558_v53, %v1554_v46  ;;  %v511_v19 = vpop.permute.xlu1 %510 }
 0x2b3   :  { %v299_v55 = vpack.c.bf16 %v297_v54, %v297_v54 }
 0x2b4   :  { %v1560_v56 = vpop.eup %1559 }
 0x2b5   :  { %1469 = vmatmul.mubr.msk.bf16.vlgmr.msra.gmra.mrb[0].mxu1 %vm276_vm5, %v299_v55  ;;  %v298_v57 = vmul.f32 %v1560_v56, %v1556_v48  ;;  %v516_v20 = vpop.permute.xlu1 %515 }
 0x2b6   :  { %1473 = vmatpush3.bf16.msra.mxu1 %v1744_v11  ;;  %1474 = vmatprep.mubr.msk.bf16.mxu1 %vm1653_vm6, %v1652_v50 }
 0x2b7   :  { %1486 = vmatprep.subr.bf16.mxu1 %v1652_v50  ;;  %v300_v58 = vpack.c.bf16 %v298_v57, %v298_v57 }
 0x2bd   :  { %1475 = vmatmul.mubr.msk.bf16.vlgmr.msra.gmra.mrb[4].mxu1 %vm276_vm5, %v300_v58 }
 0x2be   :  { %1488 = vmatprep.mubr.msk.bf16.mxu1 %vm1653_vm6, %v1652_v50 }
 0x2de   :  { %v1810_v21 = vpop.trf.xlu1 }
 0x2e2   :  { %v1812_v22 = vpop.trf.xlu1 }
 0x388   :  { %v338_v1 = vpop.f32.mrb[0].mxu1 }
 0x389   :  { %v593_v2 = vpack.c.bf16 %v338_v1, %v338_v1  ;;  %v1470_v3 = vpop.f32.mrb[1].mxu1 }
 0x38a   :  { %v341_v4 = vpop.f32.mrb[2].mxu1 }
 0x38b   :  { %v1471_v5 = vpop.f32.mrb[3].mxu1  ;;  %v600_v6 = vsel %vm598_vm7, %v593_v2, 0 }
 0x38c   :  { %1487 = vmatpush3.bf16.msra.mxu1 %v600_v6 }
 0x390   :  { %v381_v7 = vpop.f32.mrb[4].mxu1 }
 0x391   :  { %v387_v8 = vpack.c.bf16 %v381_v7, %v338_v1  ;;  %v594_v9 = vpack.c.bf16 %v381_v7, %v381_v7  ;;  %v1476_v10 = vpop.f32.mrb[5].mxu1 }
 0x392   :  { %v384_v11 = vpop.f32.mrb[6].mxu1 }
 0x393   :  { %v1477_v12 = vpop.f32.mrb[7].mxu1  ;;  %1483 = vmatmul.mubr.msk.bf16.vlgmr.msra.gmra.mrb[4].mxu0 %vm132_vm0, %v387_v8  ;;  %v647_v13 = vsel %vm598_vm7, %v594_v9, 0 }
 0x394   :  { %1493 = vmatpush3.bf16.msra.mxu0 %v647_v13  ;;  %1494 = vmatprep.mubr.msk.bf16.mxu0 %vm1653_vm6, %v1652_v50 }
 0x395   :  { %1506 = vmatprep.subr.bf16.mxu0 %v1652_v50 }
 0x466   :  { %v427_v14 = vpop.f32.mrb[4].mxu0 }
 0x467   :  { %434 = vxpose.xlu1.b32.start.end [1/1] (short) (narrow) %v427_v14, 8  ;;  %v1484_v15 = vpop.f32.mrb[5].mxu0 }
 0x468   :  { %v430_v16 = vpop.f32.mrb[6].mxu0 }
 0x469   :  { %466 = vxpose.xlu0.b32.start.end [1/1] (short) (narrow) %v430_v16, 8  ;;  %v1485_v17 = vpop.f32.mrb[7].mxu0 }
 0x46b   :  { %92 = vxpose.xlu1.b32.start.end [1/1] (short) (narrow) %v1759_v31, 16 }
 0x4e7   :  { %v450_v24 = vpop.trf.xlu1 }
 0x4e8   :  { %v521_v25 = vrot.slane %v450_v24, %v1757_v26 }
 0x4e9   :  { %v482_v27 = vpop.trf.xlu0 }
 0x4ea   :  { %v526_v28 = vadd.f32 %v521_v25, %v501_v23  ;;  %v527_v29 = vadd.f32 %v521_v25, %v506_v18  ;;  %v525_v30 = vrot.slane %v482_v27, %v1757_v26  ;;  %v712_v27 = vld [vmem:[%s1949_s5] sm:$0xff] }
 0x4eb   :  { %v1816_v32 = vpop.trf.xlu1 }
 0x4ec   :  { %v534_v33 = vmul.f32 0.2, %v526_v28  ;;  %v535_v35 = vmul.f32 0.2, %v527_v29  ;;  %v528_v36 = vadd.f32 %v525_v30, %v511_v19  ;;  %v529_v37 = vadd.f32 %v525_v30, %v516_v20  ;;  %v714_v30 = vld [vmem:[%s1949_s5 + $0x10] sm:$0xff] }
 0x4ed   :  { %vm531_vm8 = vcmp.gt.f32.partialorder %v527_v29, 0.0  ;;  %vm530_vm9 = vcmp.gt.f32.partialorder %v526_v28, 0.0 }
 0x4ee   :  { %v536_v38 = vmul.f32 0.2, %v528_v36  ;;  %v537_v39 = vmul.f32 0.2, %v529_v37  ;;  %vm532_vm10 = vcmp.gt.f32.partialorder %v528_v36, 0.0  ;;  %vm533_vm11 = vcmp.gt.f32.partialorder %v529_v37, 0.0 }
 0x4ef   :  { %v1818_v40 = vpop.trf.xlu1  ;;  %v539_v41 = vsel %vm531_vm8, %v527_v29, %v535_v35  ;;  %v538_v42 = vsel %vm530_vm9, %v526_v28, %v534_v33  ;;  %v713_v28 = vld [vmem:[%s1949_s5 + $0x8] sm:$0xff]  ;;  %v715_v33 = vld [vmem:[%s1949_s5 + $0x18] sm:$0xff]  ;;  %s1654_s5 = smov 96   ;;  %vm1334_vm8 = vcmask 1041409   ;;  %vm1337_vm9 = vcmask 254976  }
 0x4f0   :  { %v540_v43 = vsel %vm532_vm10, %v528_v36, %v536_v38  ;;  %v541_v44 = vsel %vm533_vm11, %v529_v37, %v537_v39  ;;  %v543_v45 = vadd.f32 %v539_v41, %v1812_v22  ;;  %v542_v46 = vadd.f32 %v538_v42, %v1810_v21 }
 0x4f1   :  { %v544_v47 = vadd.f32 %v540_v43, %v1816_v32  ;;  %v545_v48 = vadd.f32 %v541_v44, %v1818_v40  ;;  %v716_v29 = vpack.c.bf16 %v713_v28, %v712_v27  ;;  %v717_v35 = vpack.c.bf16 %v715_v33, %v714_v30 }
 0x4f2   :  { %v550_v49 = vsel %vm546_vm12, %v543_v45, -inf  ;;  %v547_v51 = vsel %vm546_vm12, %v542_v46, -inf  ;;  %v1655_v28 = vmov 33  }
 0x4f3   :  { %551 = vmax.xlane.f32.xlu1 %v550_v49  ;;  %548 = vmax.xlane.f32.xlu0 %v547_v51  ;;  %v556_v52 = vsel %vm546_vm12, %v545_v48, -inf  ;;  %v553_v53 = vsel %vm546_vm12, %v544_v47, -inf }
 0x4f4   :  { %1498 = vmatprep.subr.bf16.mxu1 %v716_v29 }
 0x4f7   :  { %557 = vmax.xlane.f32.xlu1 %v556_v52  ;;  %554 = vmax.xlane.f32.xlu0 %v553_v53 }
 0x580   :  { %v552_v54 = vpop.xlane.xlu1 %551  ;;  %v549_v55 = vpop.xlane.xlu0 %548 }
 0x581   :  { %v560_v56 = vsub.f32 %v543_v45, %v552_v54  ;;  %v559_v57 = vsub.f32 %v542_v46, %v549_v55 }
 0x583   :  { %v565_v58 = vmul.f32 1.442695, %v560_v56  ;;  %v563_v59 = vmul.f32 1.442695, %v559_v57 }
 0x584   :  { %v558_v60 = vpop.xlane.xlu1 %557  ;;  %v555_v61 = vpop.xlane.xlu0 %554 }
 0x585   :  { %1561 = vpow2.f32 %v565_v58  ;;  %v562_v62 = vsub.f32 %v545_v48, %v558_v60  ;;  %v561_v63 = vsub.f32 %v544_v47, %v555_v61 }
 0x586   :  { %1563 = vpow2.f32 %v563_v59 }
 0x587   :  { %v569_v0 = vmul.f32 1.442695, %v562_v62  ;;  %v567_v1 = vmul.f32 1.442695, %v561_v63 }
 0x589   :  { %1565 = vpow2.f32 %v569_v0 }
 0x58a   :  { %1567 = vpow2.f32 %v567_v1 }
 0x58f   :  { %v1562_v2 = vpop.eup %1561 }
 0x590   :  { %v1564_v3 = vpop.eup %1563  ;;  %v574_v4 = vsel %vm546_vm12, %v1562_v2, 0.0 }
 0x591   :  { %575 = vadd.xlane.f32.xlu1 %v574_v4  ;;  %v571_v5 = vsel %vm546_vm12, %v1564_v3, 0.0 }
 0x592   :  { %572 = vadd.xlane.f32.xlu0 %v571_v5 }
 0x593   :  { %v1566_v6 = vpop.eup %1565 }
 0x594   :  { %v1568_v7 = vpop.eup %1567  ;;  %v580_v8 = vsel %vm546_vm12, %v1566_v6, 0.0 }
 0x595   :  { %581 = vadd.xlane.f32.xlu1 %v580_v8  ;;  %v577_v9 = vsel %vm546_vm12, %v1568_v7, 0.0 }
 0x596   :  { %578 = vadd.xlane.f32.xlu0 %v577_v9 }
 0x61e   :  { %v576_v10 = vpop.xlane.xlu1 %575 }
 0x61f   :  { %1569 = vrcp.f32 %v576_v10  ;;  %v573_v11 = vpop.xlane.xlu0 %572  ;;  %v858_v10 = vstv %s1420_s29 }
 0x620   :  { %1571 = vrcp.f32 %v573_v11 }
 0x622   :  { %v582_v12 = vpop.xlane.xlu1 %581 }
 0x623   :  { %1573 = vrcp.f32 %v582_v12  ;;  %v579_v13 = vpop.xlane.xlu0 %578 }
 0x624   :  { %1575 = vrcp.f32 %v579_v13 }
 0x629   :  { %v1570_v14 = vpop.eup %1569 }
 0x62a   :  { %v1572_v15 = vpop.eup %1571  ;;  %v588_v16 = vmul.f32 %v1570_v14, %v1562_v2 }
 0x62b   :  { %v587_v17 = vmul.f32 %v1572_v15, %v1564_v3 }
 0x62d   :  { %v1574_v18 = vpop.eup %1573  ;;  %v591_v19 = vpack.c.bf16 %v588_v16, %v587_v17 }
 0x62e   :  { %v1576_v20 = vpop.eup %1575  ;;  %v590_v23 = vmul.f32 %v1574_v18, %v1566_v6 }
 0x62f   :  { %v589_v24 = vmul.f32 %v1576_v20, %v1568_v7  ;;  %1489 = vmatmul.mubr.msk.bf16.vlgmr.msra.gmra.mrb[8].mxu1 %vm546_vm12, %v591_v19 }
 0x630   :  { %1499 = vmatpush3.bf16.msra.mxu1 %v716_v29 }
 0x631   :  { %v592_v25 = vpack.c.bf16 %v590_v23, %v589_v24  ;;  %1500 = vmatprep.subr.bf16.mxu1 %v717_v35 }
 0x633   :  { %1495 = vmatmul.mubr.msk.bf16.vlgmr.msra.gmra.mrb[8].mxu0 %vm546_vm12, %v592_v25 }
 0x634   :  { %1508 = vmatprep.mubr.msk.bf16.mxu0 %vm1653_vm6, %v1652_v50  ;;  %1501 = vmatpush3.bf16.msra.mxu1 %v717_v35 }
 0x635   :  { %1512 = vmatprep.subr.bf16.mxu1 %v1652_v50 }
 0x702   :  { %v636_v36 = vpop.f32.mrb[8].mxu1 }
 0x703   :  { %v694_v37 = vmul.f32 1.442695, %v636_v36  ;;  %v1490_v38 = vpop.f32.mrb[9].mxu1  ;;  %vm690_vm13 = vcmp.gt.f32.partialorder %v636_v36, 0.0 }
 0x704   :  { %v639_v39 = vpop.f32.mrb[10].mxu1 }
 0x705   :  { %1577 = vpow2.f32 %v694_v37  ;;  %v696_v41 = vmul.f32 1.442695, %v639_v39  ;;  %v1491_v42 = vpop.f32.mrb[11].mxu1  ;;  %vm691_vm14 = vcmp.gt.f32.partialorder %v639_v39, 0.0 }
 0x706   :  { %v683_v43 = vpop.f32.mrb[8].mxu0 }
 0x707   :  { %1579 = vpow2.f32 %v696_v41  ;;  %v698_v44 = vmul.f32 1.442695, %v683_v43  ;;  %v1496_v45 = vpop.f32.mrb[9].mxu0  ;;  %vm692_vm15 = vcmp.gt.f32.partialorder %v683_v43, 0.0 }
 0x708   :  { %v686_v46 = vpop.f32.mrb[10].mxu0 }
 0x709   :  { %1581 = vpow2.f32 %v698_v44  ;;  %v700_v47 = vmul.f32 1.442695, %v686_v46  ;;  %v1497_v48 = vpop.f32.mrb[11].mxu0  ;;  %vm693_vm1 = vcmp.gt.f32.partialorder %v686_v46, 0.0  ;;  %v774_v44 = vld [vmem:[%s1950_s6 + $0x8] sm:$0xff] }
 0x70b   :  { %1583 = vpow2.f32 %v700_v47 }
 0x70f   :  { %v1578_v49 = vpop.eup %1577 }
 0x710   :  { %v1414_v51 = vadd.f32 -1.0, %v1578_v49 }
 0x711   :  { %v1580_v52 = vpop.eup %1579 }
 0x712   :  { %v1415_v53 = vadd.f32 -1.0, %v1580_v52  ;;  %v706_v55 = vsel %vm690_vm13, %v636_v36, %v1414_v51  ;;  %v775_v52 = vld [vmem:[%s1950_s6 + $0x10] sm:$0xff] }
 0x713   :  { %v1582_v54 = vpop.eup %1581 }
 0x714   :  { %v707_v56 = vsel %vm691_vm14, %v639_v39, %v1415_v53  ;;  %v1416_v57 = vadd.f32 -1.0, %v1582_v54  ;;  %v776_v53 = vld [vmem:[%s1950_s6 + $0x18] sm:$0xff] }
 0x715   :  { %v1584_v58 = vpop.eup %1583  ;;  %v710_v59 = vpack.c.bf16 %v707_v56, %v706_v55  ;;  %v991_v55 = vpack.c.bf16 %v776_v53, %v775_v52 }
 0x716   :  { %v1417_v60 = vadd.f32 -1.0, %v1584_v58  ;;  %v708_v61 = vsel %vm692_vm15, %v683_v43, %v1416_v57  ;;  %v773_v43 = vld [vmem:[%s1950_s6] sm:$0xff] }
 0x717   :  { %1502 = vmatprep.mubr.msk.bf16.mxu1 %vm132_vm0, %v710_v59  ;;  %v990_v49 = vpack.c.bf16 %v774_v44, %v773_v43 }
 0x718   :  { %v709_v62 = vsel %vm693_vm1, %v686_v46, %v1417_v60 }
 0x719   :  { %v711_v63 = vpack.c.bf16 %v709_v62, %v708_v61 }
 0x71b   :  { %1503 = vmatmul.mubr.msk.bf16.vlgmr.msra.gmra.mrb[12].mxu1 %vm132_vm0, %v711_v63 }
 0x71c   :  { %1514 = vmatprep.mubr.msk.bf16.mxu1 %vm1653_vm6, %v1652_v50 }
 0x7ee   :  { %v1504_v0 = vpop.f32.mrb[12].mxu1 }
 0x7ef   :  { %786 = vrot.lane.b32.xlu1 %v1504_v0, %s1654_s5  ;;  %v758_v1 = vpop.f32.mrb[13].mxu1 }
 0x7f0   :  { %782 = vrot.lane.b32.xlu0 %v758_v1, %s1654_s5  ;;  %v1505_v2 = vpop.f32.mrb[14].mxu1 }
 0x7f1   :  { %v902_v3 = vpack.c.bf16 %v1505_v2, %v1504_v0  ;;  %v761_v4 = vpop.f32.mrb[15].mxu1 }
 0x7f2   :  { %v901_v5 = vpack.c.bf16 %v761_v4, %v758_v1 }
 0x7f3   :  { %1513 = vmatpush3.bf16.msra.mxu1 %v902_v3  ;;  %784 = vrot.lane.b32.xlu1 %v761_v4, %s1654_s5 }
 0x7f4   :  { %788 = vrot.lane.b32.xlu0 %v1505_v2, %s1654_s5  ;;  %1507 = vmatpush3.bf16.msra.mxu0 %v901_v5 }
 0x7f5   :  { %1518 = vmatprep.subr.bf16.mxu0 %v1652_v50  ;;  %1526 = vmatprep.subr.bf16.mxu1 %v1652_v50 }
 0x861   :  { %v787_v6 = vpop.permute.xlu1 %786 }
 0x862   :  { %v783_v7 = vpop.permute.xlu0 %782  ;;  %826 = vxpose.xlu0.b32.start [1/2] (short) (narrow) %v787_v6, 8 }
 0x863   :  { %794 = vxpose.xlu1.b32.start [1/2] (short) (narrow) %v783_v7, 8 }
 0x865   :  { %v785_v8 = vpop.permute.xlu1 %784 }
 0x866   :  { %v789_v9 = vpop.permute.xlu0 %788 }
 0x867   :  { %827 = vxpose.xlu0.b32.end [2/2] (short) (narrow) %v789_v9, 8  ;;  %795 = vxpose.xlu1.b32.end [2/2] (short) (narrow) %v785_v8, 8 }
 0x885   :  { %1550 = vset.pattern.permute.xlu1 %v1655_v28 }
 0x890   :  { %1549 = vset.pattern.permute.xlu0 %v1655_v28 }
 0x8e3   :  { %v842_v11 = vpop.trf.xlu0  ;;  %v810_v12 = vpop.trf.xlu1 }
 0x8e4   :  { %v860_v13 = vadd.f32 %v858_v10, %v842_v11  ;;  %v859_v14 = vadd.f32 %v858_v10, %v810_v12 }
 0x8e6   :  { %vm862_vm2 = vcmp.gt.f32.partialorder %v860_v13, 0.0  ;;  %v864_v15 = vmul.f32 0.2, %v860_v13  ;;  %vm861_vm3 = vcmp.gt.f32.partialorder %v859_v14, 0.0  ;;  %v863_v16 = vmul.f32 0.2, %v859_v14 }
 0x8e8   :  { %v866_v17 = vsel %vm862_vm2, %v860_v13, %v864_v15  ;;  %v865_v18 = vsel %vm861_vm3, %v859_v14, %v863_v16 }
 0x8e9   :  { %v874_v19 = vrot.slane %v866_v17, %v1757_v26  ;;  %v870_v20 = vrot.slane %v865_v18, %v1757_v26 }
 0x8eb   :  { %v876_v23 = vadd.f32 %v874_v19, %v1759_v31  ;;  %v875_v24 = vadd.f32 %v870_v20, %v1762_v34 }
 0x8ed   :  { %v880_v25 = vsel %vm276_vm5, %v876_v23, -inf  ;;  %v877_v27 = vsel %vm276_vm5, %v875_v24, -inf }
 0x8ee   :  { %881 = vmax.xlane.f32.xlu1 %v880_v25  ;;  %878 = vmax.xlane.f32.xlu0 %v877_v27 }
 0x97b   :  { %v879_v29 = vpop.xlane.xlu0 %878  ;;  %v882_v30 = vpop.xlane.xlu1 %881 }
 0x97c   :  { %v883_v33 = vsub.f32 %v875_v24, %v879_v29  ;;  %v884_v35 = vsub.f32 %v876_v23, %v882_v30 }
 0x97e   :  { %v885_v36 = vmul.f32 1.442695, %v883_v33  ;;  %v887_v37 = vmul.f32 1.442695, %v884_v35 }
 0x980   :  { %1585 = vpow2.f32 %v885_v36 }
 0x981   :  { %1587 = vpow2.f32 %v887_v37 }
 0x98a   :  { %v1586_v31 = vpop.eup %1585 }
 0x98b   :  { %v1588_v38 = vpop.eup %1587  ;;  %v889_v34 = vsel %vm276_vm5, %v1586_v31, 0.0 }
 0x98c   :  { %890 = vadd.xlane.f32.xlu0 %v889_v34  ;;  %v892_v39 = vsel %vm276_vm5, %v1588_v38, 0.0 }
 0x98d   :  { %893 = vadd.xlane.f32.xlu1 %v892_v39 }
 0x99e   :  { %1105 = vperm.xlu1 %1550, %v761_v4  }
 0x9a2   :  { %1109 = vperm.xlu1 %1550, %v1504_v0   ;;  %1101 = vperm.xlu0 %1549, %v758_v1  }
 0x9a6   :  { %1113 = vperm.xlu1 %1550, %v1505_v2  }
 0xa19   :  { %v891_v41 = vpop.xlane.xlu0 %890 }
 0xa1a   :  { %1589 = vrcp.f32 %v891_v41  ;;  %v894_v42 = vpop.xlane.xlu1 %893 }
 0xa1b   :  { %1591 = vrcp.f32 %v894_v42 }
 0xa1e   :  { %v1106_v9 = vpop.permute.xlu1 %1105 }
 0xa21   :  { %v1102_v12 = vpop.permute.xlu0 %1101 }
 0xa22   :  { %v1110_v10 = vpop.permute.xlu1 %1109 }
 0xa24   :  { %v1590_v45 = vpop.eup %1589 }
 0xa25   :  { %v1592_v46 = vpop.eup %1591  ;;  %v897_v47 = vmul.f32 %v1590_v45, %v1586_v31 }
 0xa26   :  { %v898_v48 = vmul.f32 %v1592_v46, %v1588_v38  ;;  %v1114_v11 = vpop.permute.xlu1 %1113 }
 0xa27   :  { %v899_v51 = vpack.c.bf16 %v897_v47, %v897_v47 }
 0xa28   :  { %v900_v54 = vpack.c.bf16 %v898_v48, %v898_v48 }
 0xa29   :  { %1509 = vmatmul.mubr.msk.bf16.vlgmr.msra.gmra.mrb[12].mxu0 %vm276_vm5, %v899_v51 }
 0xa2a   :  { %1515 = vmatmul.mubr.msk.bf16.vlgmr.msra.gmra.mrb[16].mxu1 %vm276_vm5, %v900_v54  ;;  %1519 = vmatpush3.bf16.msra.mxu0 %v990_v49 }
 0xa2b   :  { %1520 = vmatprep.subr.bf16.mxu0 %v1652_v50  ;;  %1522 = vmatprep.mubr.msk.bf16.mxu0 %vm1653_vm6, %v1652_v50 }
 0xa2c   :  { %1528 = vmatprep.mubr.msk.bf16.mxu1 %vm1653_vm6, %v1652_v50 }
 0xa2e   :  { %1521 = vmatpush3.bf16.msra.mxu0 %v991_v55 }
 0xa2f   :  { %1532 = vmatprep.subr.bf16.mxu0 %v1652_v50 }
 0xafc   :  { %v940_v56 = vpop.f32.mrb[12].mxu0 }
 0xafd   :  { %v1190_v57 = vpack.c.bf16 %v940_v56, %v940_v56  ;;  %v983_v58 = vpop.f32.mrb[16].mxu1  ;;  %v1510_v59 = vpop.f32.mrb[13].mxu0 }
 0xafe   :  { %v989_v60 = vpack.c.bf16 %v983_v58, %v940_v56  ;;  %v1191_v61 = vpack.c.bf16 %v983_v58, %v983_v58  ;;  %v1516_v62 = vpop.f32.mrb[17].mxu1  ;;  %v943_v63 = vpop.f32.mrb[14].mxu0  ;;  %v1656_v58 = vmov 0   ;;  %v1286_v59 = vld [vmem:[%s1946_s2] sm:$0xff] }
 0xaff   :  { %v986_v0 = vpop.f32.mrb[18].mxu1  ;;  %v1511_v1 = vpop.f32.mrb[15].mxu0  ;;  %v1196_v2 = vsel %vm598_vm7, %v1190_v57, 0  ;;  %v1287_v57 = vld [vmem:[%s1946_s2 + $0x8] sm:$0xff] }
 0xb00   :  { %v1517_v3 = vpop.f32.mrb[19].mxu1  ;;  %1523 = vmatmul.mubr.msk.bf16.vlgmr.msra.gmra.mrb[16].mxu0 %vm132_vm0, %v989_v60  ;;  %1527 = vmatpush3.bf16.msra.mxu1 %v1196_v2  ;;  %v1243_v4 = vsel %vm598_vm7, %v1191_v61, 0  ;;  %v1288_v60 = vld [vmem:[%s1946_s2 + $0x10] sm:$0xff]  ;;  %v1289_v61 = vld [vmem:[%s1946_s2 + $0x18] sm:$0xff] }
 0xb01   :  { %1533 = vmatpush3.bf16.msra.mxu0 %v1243_v4  ;;  %1534 = vmatprep.mubr.msk.bf16.mxu0 %vm1653_vm6, %v1652_v50 }
 0xbd3   :  { %v1029_v5 = vpop.f32.mrb[16].mxu0 }
 0xbd4   :  { %1036 = vxpose.xlu1.b32.start.end [1/1] (short) (narrow) %v1029_v5, 8  ;;  %v1524_v6 = vpop.f32.mrb[17].mxu0 }
 0xbd5   :  { %v1032_v7 = vpop.f32.mrb[18].mxu0 }
 0xbd6   :  { %1068 = vxpose.xlu0.b32.start.end [1/1] (short) (narrow) %v1032_v7, 8  ;;  %v1525_v8 = vpop.f32.mrb[19].mxu0 }
 0xbf2   :  { %1552 = vset.pattern.permute.xlu1 %v1656_v58 }
 0xbff   :  { %1551 = vset.pattern.permute.xlu0 %v1656_v58 }
 0xc54   :  { %v1052_v13 = vpop.trf.xlu1 }
 0xc55   :  { %v1119_v14 = vrot.slane %v1052_v13, %v1757_v26 }
 0xc56   :  { %v1084_v15 = vpop.trf.xlu0 }
 0xc57   :  { %v1124_v16 = vadd.f32 %v1119_v14, %v1102_v12  ;;  %v1125_v17 = vadd.f32 %v1119_v14, %v1106_v9  ;;  %v1123_v18 = vrot.slane %v1084_v15, %v1757_v26 }
 0xc59   :  { %v1132_v19 = vmul.f32 0.2, %v1124_v16  ;;  %v1133_v50 = vmul.f32 0.2, %v1125_v17  ;;  %v1126_v20 = vadd.f32 %v1123_v18, %v1110_v10  ;;  %v1127_v23 = vadd.f32 %v1123_v18, %v1114_v11 }
 0xc5a   :  { %vm1128_vm4 = vcmp.gt.f32.partialorder %v1124_v16, 0.0  ;;  %vm1129_vm5 = vcmp.gt.f32.partialorder %v1125_v17, 0.0 }
 0xc5b   :  { %v1134_v24 = vmul.f32 0.2, %v1126_v20  ;;  %v1135_v25 = vmul.f32 0.2, %v1127_v23  ;;  %v1136_v27 = vsel %vm1128_vm4, %v1124_v16, %v1132_v19  ;;  %v1137_v28 = vsel %vm1129_vm5, %v1125_v17, %v1133_v50 }
 0xc5c   :  { %v1140_v29 = vadd.f32 %v1136_v27, %v1810_v21  ;;  %v1141_v30 = vadd.f32 %v1137_v28, %v1812_v22  ;;  %vm1130_vm6 = vcmp.gt.f32.partialorder %v1126_v20, 0.0  ;;  %vm1131_vm7 = vcmp.gt.f32.partialorder %v1127_v23, 0.0 }
 0xc5d   :  { %v1138_v33 = vsel %vm1130_vm6, %v1126_v20, %v1134_v24  ;;  %v1139_v37 = vsel %vm1131_vm7, %v1127_v23, %v1135_v25 }
 0xc5e   :  { %v1144_v35 = vsel %vm546_vm12, %v1140_v29, -inf  ;;  %v1147_v26 = vsel %vm546_vm12, %v1141_v30, -inf  ;;  %v1142_v36 = vadd.f32 %v1138_v33, %v1816_v32  ;;  %v1143_v38 = vadd.f32 %v1139_v37, %v1818_v40 }
 0xc5f   :  { %1145 = vmax.xlane.f32.xlu1 %v1144_v35  ;;  %1148 = vmax.xlane.f32.xlu0 %v1147_v26 }
 0xc60   :  { %v1150_v31 = vsel %vm546_vm12, %v1142_v36, -inf  ;;  %v1153_v21 = vsel %vm546_vm12, %v1143_v38, -inf }
 0xc63   :  { %1151 = vmax.xlane.f32.xlu1 %v1150_v31 }
 0xc67   :  { %1154 = vmax.xlane.f32.xlu1 %v1153_v21 }
 0xcec   :  { %v1146_v22 = vpop.xlane.xlu1 %1145  ;;  %v1149_v34 = vpop.xlane.xlu0 %1148 }
 0xced   :  { %v1156_v39 = vsub.f32 %v1140_v29, %v1146_v22  ;;  %v1157_v41 = vsub.f32 %v1141_v30, %v1149_v34 }
 0xcef   :  { %v1160_v42 = vmul.f32 1.442695, %v1156_v39  ;;  %v1162_v43 = vmul.f32 1.442695, %v1157_v41 }
 0xcf0   :  { %v1152_v44 = vpop.xlane.xlu1 %1151 }
 0xcf1   :  { %1593 = vpow2.f32 %v1160_v42  ;;  %v1158_v32 = vsub.f32 %v1142_v36, %v1152_v44 }
 0xcf2   :  { %1595 = vpow2.f32 %v1162_v43 }
 0xcf3   :  { %v1164_v45 = vmul.f32 1.442695, %v1158_v32 }
 0xcf4   :  { %v1155_v46 = vpop.xlane.xlu1 %1154 }
 0xcf5   :  { %1597 = vpow2.f32 %v1164_v45  ;;  %v1159_v47 = vsub.f32 %v1143_v38, %v1155_v46 }
 0xcf7   :  { %v1166_v48 = vmul.f32 1.442695, %v1159_v47 }
 0xcf9   :  { %1599 = vpow2.f32 %v1166_v48 }
 0xcfb   :  { %v1594_v40 = vpop.eup %1593 }
 0xcfc   :  { %v1168_v49 = vsel %vm546_vm12, %v1594_v40, 0.0  ;;  %v1596_v51 = vpop.eup %1595 }
 0xcfd   :  { %1169 = vadd.xlane.f32.xlu1 %v1168_v49  ;;  %v1171_v54 = vsel %vm546_vm12, %v1596_v51, 0.0 }
 0xcff   :  { %v1598_v52 = vpop.eup %1597 }
 0xd00   :  { %v1174_v53 = vsel %vm546_vm12, %v1598_v52, 0.0 }
 0xd01   :  { %1175 = vadd.xlane.f32.xlu0 %v1174_v53  ;;  %1172 = vadd.xlane.f32.xlu1 %v1171_v54 }
 0xd03   :  { %v1600_v55 = vpop.eup %1599 }
 0xd04   :  { %v1177_v56 = vsel %vm546_vm12, %v1600_v55, 0.0 }
 0xd05   :  { %1178 = vadd.xlane.f32.xlu1 %v1177_v56 }
 0xd16   :  { %1297 = vperm.xlu1 %1552, %v1287_v57  }
 0xd17   :  { %1292 = vperm.xlu0 %1551, %v1286_v59  }
 0xd1a   :  { %1302 = vperm.xlu1 %1552, %v1288_v60  }
 0xd1e   :  { %1307 = vperm.xlu1 %1552, %v1289_v61  }
 0xd8a   :  { %v1170_v62 = vpop.xlane.xlu1 %1169 }
 0xd8b   :  { %1601 = vrcp.f32 %v1170_v62 }
 0xd8e   :  { %v1173_v63 = vpop.xlane.xlu1 %1172  ;;  %v1176_v0 = vpop.xlane.xlu0 %1175 }
 0xd8f   :  { %1603 = vrcp.f32 %v1173_v63 }
 0xd90   :  { %1605 = vrcp.f32 %v1176_v0  ;;  %v1426_v0 = vld [vmem:[%s1952_s8] ss:$0 sm:$0xff] }
 0xd92   :  { %v1179_v1 = vpop.xlane.xlu1 %1178 }
 0xd93   :  { %1607 = vrcp.f32 %v1179_v1 }
 0xd95   :  { %v1602_v2 = vpop.eup %1601 }
 0xd96   :  { %v1184_v4 = vmul.f32 %v1602_v2, %v1594_v40  ;;  %v1298_v12 = vpop.permute.xlu1 %1297  ;;  %v1293_v13 = vpop.permute.xlu0 %1292 }
 0xd99   :  { %v1604_v3 = vpop.eup %1603 }
 0xd9a   :  { %v1185_v5 = vmul.f32 %v1604_v3, %v1596_v51  ;;  %v1606_v6 = vpop.eup %1605  ;;  %v1303_v14 = vpop.permute.xlu1 %1302 }
 0xd9b   :  { %v1186_v9 = vmul.f32 %v1606_v6, %v1598_v52 }
 0xd9c   :  { %v1188_v7 = vpack.c.bf16 %v1185_v5, %v1184_v4  ;;  %v1427_v4 = vld [vmem:[%s1953_s9] ss:$0 sm:$0xff] }
 0xd9d   :  { %v1608_v8 = vpop.eup %1607 }
 0xd9e   :  { %v1187_v10 = vmul.f32 %v1608_v8, %v1600_v55  ;;  %1529 = vmatmul.mubr.msk.bf16.vlgmr.msra.gmra.mrb[20].mxu1 %vm546_vm12, %v1188_v7  ;;  %v1308_v28 = vpop.permute.xlu1 %1307 }
 0xda0   :  { %v1189_v11 = vpack.c.bf16 %v1187_v10, %v1186_v9 }
 0xda2   :  { %1535 = vmatmul.mubr.msk.bf16.vlgmr.msra.gmra.mrb[20].mxu0 %vm546_vm12, %v1189_v11 }
 0xe71   :  { %v1232_v15 = vpop.f32.mrb[20].mxu1 }
 0xe72   :  { %v1310_v16 = vmul.f32 %v1293_v13, %v1232_v15  ;;  %v1530_v17 = vpop.f32.mrb[21].mxu1 }
 0xe73   :  { %v1235_v18 = vpop.f32.mrb[22].mxu1 }
 0xe74   :  { %v1311_v19 = vmul.f32 %v1298_v12, %v1235_v18  ;;  %v1531_v50 = vpop.f32.mrb[23].mxu1  ;;  %v1314_v23 = vsel %vm132_vm0, %v1310_v16, 0.0 }
 0xe75   :  { %v1279_v20 = vpop.f32.mrb[20].mxu0 }
 0xe76   :  { %v1315_v24 = vsel %vm132_vm0, %v1311_v19, 0.0  ;;  %v1312_v25 = vmul.f32 %v1303_v14, %v1279_v20  ;;  %v1536_v27 = vpop.f32.mrb[21].mxu0 }
 0xe77   :  { %v1316_v29 = vadd.f32 %v1315_v24, %v1314_v23  ;;  %v1282_v30 = vpop.f32.mrb[22].mxu0 }
 0xe78   :  { %v1313_v33 = vmul.f32 %v1308_v28, %v1282_v30  ;;  %v1537_v35 = vpop.f32.mrb[23].mxu0  ;;  %v1323_v36 = vsel %vm132_vm0, %v1312_v25, 0.0 }
 0xe79   :  { %v1317_v26 = vrot.slane %v1316_v29, 4 }
 0xe7a   :  { %v1324_v37 = vsel %vm132_vm0, %v1313_v33, 0.0 }
 0xe7b   :  { %v1318_v31 = vadd.f32 %v1317_v26, %v1316_v29  ;;  %v1325_v38 = vadd.f32 %v1324_v37, %v1323_v36 }
 0xe7d   :  { %v1319_v21 = vrot.slane %v1318_v31, 2  ;;  %v1326_v22 = vrot.slane %v1325_v38, 4 }
 0xe7f   :  { %v1320_v34 = vadd.f32 %v1319_v21, %v1318_v31  ;;  %v1327_v39 = vadd.f32 %v1326_v22, %v1325_v38 }
 0xe81   :  { %v1328_v41 = vrot.slane %v1327_v39, 2  ;;  %v1321_v43 = vrot.slane %v1320_v34, 1 }
 0xe83   :  { %v1329_v42 = vadd.f32 %v1328_v41, %v1327_v39  ;;  %v1322_v32 = vadd.f32 %v1321_v43, %v1320_v34 }
 0xe85   :  { %v1330_v44 = vrot.slane %v1329_v42, 1 }
 0xe87   :  { %v1331_v45 = vadd.f32 %v1330_v44, %v1329_v42 }
 0xe89   :  { %v1335_v46 = vsel %vm1334_vm8, %v1331_v45, %v1322_v32 }
 0xe8a   :  { %v1338_v47 = vsel %vm1337_vm9, %v1335_v46, 0.0 }
 0xe8b   :  { %1339 = vadd.xlane.f32.xlu1 %v1338_v47 }
 0xf18   :  { %v1340_v48 = vpop.xlane.xlu1 %1339 }
 0xf19   :  { %v1342_v40 = vmul.f32 0.03125, %v1340_v48 }
 0xf1b   :  { %v1344_v49 = vrot.slane %v1342_v40, 1  ;;  %v1347_v51 = vsub.f32 %v1322_v32, %v1342_v40 }
 0xf1d   :  { %v1348_v52 = vsub.f32 %v1331_v45, %v1344_v49  ;;  %v1349_v54 = vmul.f32 %v1347_v51, %v1347_v51 }
 0xf1f   :  { %v1350_v53 = vmul.f32 %v1348_v52, %v1348_v52 }
 0xf21   :  { %v1353_v55 = vrot.slane %v1350_v53, 7 }
 0xf23   :  { %v1354_v56 = vsel %vm1334_vm8, %v1353_v55, %v1349_v54 }
 0xf24   :  { %v1356_v57 = vsel %vm1337_vm9, %v1354_v56, 0.0 }
 0xf25   :  { %1357 = vadd.xlane.f32.xlu0 %v1356_v57 }
 0xfb2   :  { %v1358_v58 = vpop.xlane.xlu0 %1357 }
 0xfb3   :  { %v1359_v59 = vmul.f32 0.03125, %v1358_v58 }
 0xfb5   :  { %v1360_v60 = vadd.f32 1e-06, %v1359_v59 }
 0xfb7   :  { %1609 = vrsqrt.f32 %v1360_v60 }
 0xfc1   :  { %v1610_v61 = vpop.eup %1609 }
 0xfc2   :  { %v1363_v62 = vrot.slane %v1610_v61, 1  ;;  %v1366_v63 = vmul.f32 %v1610_v61, %v1347_v51 }
 0xfc4   :  { %v1367_v1 = vmul.f32 %v1363_v62, %v1348_v52  ;;  %v1375_v2 = vmul.f32 %v1426_v0, %v1366_v63 }
 0xfc6   :  { %v1376_v3 = vmul.f32 %v1426_v0, %v1367_v1  ;;  %v1384_v6 = vadd.f32 %v1427_v4, %v1375_v2 }
 0xfc8   :  { %v1385_v5 = vadd.f32 %v1427_v4, %v1376_v3 }
 0xfca   :  { %v1388_v7 = vrot.slane %v1385_v5, 7 }
 0xfcc   :  { %v1389_v8 = vsel %vm1334_vm8, %v1388_v7, %v1384_v6 }
 0xfcd   :  { %1391 = vst.msk [vmem:[#allocation5] sm:$0x3] %vm1337_vm9, %v1389_v8 }
 0xfce   :  { %1634 = shalt.err (!%p1631_p9)
}
 0xfcf   :  { %s1635_s9 = scalar_lea.hbm %s1954_s10, 32 }
 0xfd0   :  { %p1636_p10 = scmp.ne.s32.totalorder %s1954_s10, %s1635_s9  ;;  %p1639_p11 = scmp.lt.u32.totalorder %s1635_s9, %s1954_s10 }
 0xfd2   :  { %p1641_p12 = pnand %p1639_p11, %p1636_p10 }
 0xfd4   :  { %1644 = shalt.err (!%p1641_p12)
}
 0xfd5   :  { %1401 = dma.vmem_to_hbm [thread:$0]  %s1399_s24, 32, %s1954_s10, [#allocation3]  }
 0xfd6   :  { %1647 = dma.done.wait [#allocation3], 32  }
 0xfd7   :  { %1648 = vsyncadd [#allocation3], 4294967264 }
 0xfd8   :  { %1405 = vsyncpa [#allocation3], 1 }
 0xfd9   :  { %1406 = vsyncpa [#allocation4], 1 }

</bundles_post_ra>
